<compile_context>
chip_gen: v7x
topology: tpu7x:2x2x1
jax: 0.10.0
libtpu: 0.0.40
codegen_flags: <defaults>
</compile_context>

<pallas_src>
import math

import jax
import jax.numpy as jnp
from jax import lax
from jax.experimental import pallas as pl
from jax.experimental.pallas import tpu as pltpu


def _round_up(x, m):
    return (x + m - 1) // m * m


def segffn_kernel(patches_ref, w1_ref, b1_ref, w2_ref, b2_ref, w3t_ref, b3t_ref,
                  out_ref):
    # patches_ref: [1, TILE_M, K]  bf16  (im2col of the 3x3x3 conv, K = 27*Cin, NO pad)
    # w1_ref:      [K, 192]        bf16  -- the 3 VoxCABHead branch convs fused along N
    # b1_ref:      [1, 192]        f32
    # w2_ref:      [192, 64]       bf16  -- SegHead 1x1 conv
    # b2_ref:      [1, 64]         f32
    # w3t_ref:     [2, 64]         bf16  -- classifier 1x1 conv, pre-transposed
    # b3t_ref:     [2, 1]          f32
    # out_ref:     [1, 2, TILE_M]  f32   (lane-dense, channel-major -> NCDHW directly)
    p = patches_ref[0]                                               # [TILE_M, K]

    # fused three-branch 3x3x3 conv: single N=192 GEMM + bias + ReLU (one epilogue pass)
    rrb = jnp.dot(p, w1_ref[...], preferred_element_type=jnp.float32) + b1_ref[...]
    rrb = jnp.maximum(rrb, 0.0).astype(jnp.bfloat16)                 # [TILE_M, 192]

    # SegHead 1x1 conv + ReLU
    h = jnp.dot(rrb, w2_ref[...], preferred_element_type=jnp.float32) + b2_ref[...]
    h = jnp.maximum(h, 0.0).astype(jnp.bfloat16)                     # [TILE_M, 64]

    # classifier 1x1 conv, transposed output: out_t[c, m] = sum_k w3t[c,k] * h[m,k].
    # Contraction is the minor dim of BOTH operands (the q @ k^T flash-attention
    # pattern), so the MXU consumes h directly and the store stays lane-dense.
    out_t = lax.dot_general(w3t_ref[...], h,
                            (((1,), (1,)), ((), ())),
                            preferred_element_type=jnp.float32)      # [2, TILE_M]
    out_ref[0] = (out_t + b3t_ref[...]).astype(out_ref.dtype)


def im2col_3x3x3(x_ncdhw):
    """NCDHW -> [B, D*H*W, 27*Cin] patches (zero padding=1); wrapper glue, plain JAX."""
    B, C, D, H, W = x_ncdhw.shape
    x = jnp.transpose(x_ncdhw, (0, 2, 3, 4, 1))                      # [B, D, H, W, C]
    xp = jnp.pad(x, ((0, 0), (1, 1), (1, 1), (1, 1), (0, 0)))
    slabs = []
    for kd in range(3):
        for kh in range(3):
            for kw in range(3):
                slabs.append(xp[:, kd:kd + D, kh:kh + H, kw:kw + W, :])
    patches = jnp.concatenate(slabs, axis=-1)                        # [B, D, H, W, 27*C]
    return patches.reshape(B, D * H * W, 27 * C)


def _pick_tile(B, D, H, W, target_rows):
    """tile_m = td * H*W: multiple of 128, clamped to what D actually needs."""
    hw = H * W
    base_td = 128 // math.gcd(hw, 128)        # smallest td with (td*hw) % 128 == 0
    d_units = -(-D // base_td)                # td-units needed to cover D
    if B == 1:
        d_units = max(1, -(-d_units // 2))    # keep >= 2 grid steps for v7x's 2 TCs
    want = max(1, target_rows // (base_td * hw))
    td = base_td * max(1, min(want, d_units))
    return td, td * hw


def segffn_forward(x_ncdhw, params, *, target_rows=2048):
    B, C, D, H, W = x_ncdhw.shape
    DHW = D * H * W
    hw = H * W
    K = 27 * C
    w1, b1, w2, b2, w3, b3 = params

    # -------- wrapper-side glue (plain JAX) --------------------------------
    base_td = 128 // math.gcd(hw, 128)
    if base_td * hw <= 8192:
        # Fuse the spatial (M) padding into a cheap pad of the raw volume's D
        # axis so the 27x bf16 patch slab is built exactly once at its final
        # shape in HBM (no K pad, no slab-level M pad).
        td, tile_m = _pick_tile(B, D, H, W, target_rows)
        D_pad = _round_up(D, td)
        xb = jnp.pad(x_ncdhw.astype(jnp.bfloat16),
                     ((0, 0), (0, 0), (0, D_pad - D), (0, 0), (0, 0)))
        patches = im2col_3x3x3(xb)                                   # [B, D_pad*hw, K]
        M_pad = D_pad * hw
    else:
        # TODO(synk): H*W admits no small 128-aligned tile; pay one slab-level M pad.
        tile_m = min(2048, _round_up(DHW, 128))
        M_pad = _round_up(DHW, tile_m)
        patches = im2col_3x3x3(x_ncdhw.astype(jnp.bfloat16))
        patches = jnp.pad(patches, ((0, 0), (0, M_pad - DHW), (0, 0)))

    # fuse the three branch convs into one [K, 192] operand (+ fused bias)
    w1c = jnp.concatenate([w1[0], w1[1], w1[2]], axis=-1).astype(jnp.bfloat16)  # [K,192]
    b1c = jnp.concatenate([b1[0], b1[1], b1[2]], axis=-1)            # [1, 192] f32
    w2b = w2.astype(jnp.bfloat16)                                    # [192, 64]
    w3t = jnp.transpose(w3, (1, 0)).astype(jnp.bfloat16)             # [2, 64]
    b3t = jnp.transpose(b3, (1, 0))                                  # [2, 1] f32

    n_m = M_pad // tile_m
    flops = 2 * B * M_pad * (K * 192 + 192 * 64 + 64 * 2)
    bytes_accessed = (patches.size * 2 + w1c.size * 2 + w2b.size * 2 + w3t.size * 2
                      + (b1c.size + b2.size + b3t.size) * 4 + B * 2 * M_pad * 4)

    out_t = pl.pallas_call(
        segffn_kernel,
        out_shape=jax.ShapeDtypeStruct((B, 2, M_pad), jnp.float32),
        grid_spec=pltpu.PrefetchScalarGridSpec(
            num_scalar_prefetch=0,
            grid=(B, n_m),
            in_specs=[
                pl.BlockSpec((1, tile_m, K), lambda b, m: (b, m, 0)),  # patches tile
                pl.BlockSpec((K, 192), lambda b, m: (0, 0)),           # fused branch W
                pl.BlockSpec((1, 192), lambda b, m: (0, 0)),           # fused branch b
                pl.BlockSpec((192, 64), lambda b, m: (0, 0)),          # seg conv1 W
                pl.BlockSpec((1, 64), lambda b, m: (0, 0)),            # seg conv1 b
                pl.BlockSpec((2, 64), lambda b, m: (0, 0)),            # classifier W^T
                pl.BlockSpec((2, 1), lambda b, m: (0, 0)),             # classifier b^T
            ],
            out_specs=pl.BlockSpec((1, 2, tile_m), lambda b, m: (b, 0, m)),
        ),
        compiler_params=pltpu.CompilerParams(
            dimension_semantics=("parallel", "parallel"),
            vmem_limit_bytes=32 * 1024 * 1024),
        cost_estimate=pl.CostEstimate(flops=flops, transcendentals=0,
                                      bytes_accessed=bytes_accessed),
    )(patches, w1c, b1c, w2b, b2, w3t, b3t)

    # [B, 2, M_pad] is already channel-major: drop spatial padding, reshape to NCDHW.
    return out_t[:, :, :DHW].reshape(B, 2, D, H, W)


def reference_forward(x_ncdhw, params):
    """Pure-JAX reference with the SAME numerics as the kernel (bf16 operands,
    f32 accumulation).  Matching the kernel's deliberate bf16 policy means the
    tight tolerance below checks kernel correctness, not the precision choice
    vs. the f32 PyTorch model."""
    w1, b1, w2, b2, w3, b3 = params
    patches = im2col_3x3x3(x_ncdhw).astype(jnp.bfloat16)             # [B, DHW, K]
    feats = [jnp.maximum(
        jnp.einsum('bpk,kn->bpn', patches, w1[br].astype(jnp.bfloat16),
                   preferred_element_type=jnp.float32) + b1[br], 0.0)
        for br in range(3)]
    rrb = jnp.concatenate(feats, axis=-1).astype(jnp.bfloat16)       # [B, DHW, 192]
    h = jnp.maximum(
        jnp.einsum('bpk,kn->bpn', rrb, w2.astype(jnp.bfloat16),
                   preferred_element_type=jnp.float32) + b2, 0.0).astype(jnp.bfloat16)
    out = jnp.einsum('bpk,kn->bpn', h, w3.astype(jnp.bfloat16),
                     preferred_element_type=jnp.float32) + b3        # [B, DHW, 2]
    B, C, D, H, W = x_ncdhw.shape
    return jnp.transpose(out.reshape(B, D, H, W, 2), (0, 4, 1, 2, 3))


def init_params(key, in_dims):
    K = 27 * in_dims
    k = jax.random.split(key, 6)
    w1 = 0.05 * jax.random.normal(k[0], (3, K, 64), jnp.float32)
    b1 = 0.01 * jax.random.normal(k[1], (3, 1, 64), jnp.float32)
    w2 = 0.05 * jax.random.normal(k[2], (192, 64), jnp.float32)
    b2 = 0.01 * jax.random.normal(k[3], (1, 64), jnp.float32)
    w3 = 0.05 * jax.random.normal(k[4], (64, 2), jnp.float32)
    b3 = 0.01 * jax.random.normal(k[5], (1, 2), jnp.float32)
    return (w1, b1, w2, b2, w3, b3)


if __name__ == "__main__":
    B, Cin, D, H, W = 2, 3, 8, 8, 8      # in_dims = 3 (small synthetic shapes)
    key = jax.random.PRNGKey(0)
    kx, kp = jax.random.split(key)
    x = jax.random.normal(kx, (B, Cin, D, H, W), jnp.float32)        # PyTorch NCDHW
    params = init_params(kp, Cin)

    out = jax.block_until_ready(segffn_forward(x, params))
    assert out.shape == (B, 2, D, H, W), out.shape

    ref = jax.block_until_ready(reference_forward(x, params))
    max_err = float(jnp.max(jnp.abs(out - ref)))
    assert max_err < 2e-3, max_err

    print("KERNEL_OK")
</pallas_src>

<mosaic_0001>
module attributes {stable_mosaic.version = 11 : i64} {
  func.func @segffn_kernel(%arg0: i32, %arg1: i32, %arg2: memref<1x512x81xbf16, #tpu.memory_space<vmem>>, %arg3: memref<81x192xbf16, #tpu.memory_space<vmem>>, %arg4: memref<1x192xf32, #tpu.memory_space<vmem>>, %arg5: memref<192x64xbf16, #tpu.memory_space<vmem>>, %arg6: memref<1x64xf32, #tpu.memory_space<vmem>>, %arg7: memref<2x64xbf16, #tpu.memory_space<vmem>>, %arg8: memref<2x1xf32, #tpu.memory_space<vmem>>, %arg9: memref<1x2x512xf32, #tpu.memory_space<vmem>>) attributes {dimension_semantics = [#tpu.dimension_semantics<parallel>, #tpu.dimension_semantics<parallel>], iteration_bounds = array<i64: 2, 1>, scalar_prefetch = 0 : i64, scratch_operands = 0 : i64, tpu.core_type = #tpu.core_type<tc>, window_params = [{transform_indices = @transform_0, window_bounds = array<i64: 1, 512, 81>}, {pipeline_mode = #tpu.pipeline_mode<synchronous>, transform_indices = @transform_1, window_bounds = array<i64: 81, 192>}, {pipeline_mode = #tpu.pipeline_mode<synchronous>, transform_indices = @transform_2, window_bounds = array<i64: 1, 192>}, {pipeline_mode = #tpu.pipeline_mode<synchronous>, transform_indices = @transform_3, window_bounds = array<i64: 192, 64>}, {pipeline_mode = #tpu.pipeline_mode<synchronous>, transform_indices = @transform_4, window_bounds = array<i64: 1, 64>}, {pipeline_mode = #tpu.pipeline_mode<synchronous>, transform_indices = @transform_5, window_bounds = array<i64: 2, 64>}, {pipeline_mode = #tpu.pipeline_mode<synchronous>, transform_indices = @transform_6, window_bounds = array<i64: 2, 1>}, {transform_indices = @transform_7, window_bounds = array<i64: 1, 2, 512>}]} {
    %c0 = arith.constant 0 : index
    %c0_0 = arith.constant 0 : index
    %c0_1 = arith.constant 0 : index
    %0 = vector.load %arg2[%c0, %c0_0, %c0_1] : memref<1x512x81xbf16, #tpu.memory_space<vmem>>, vector<1x512x81xbf16>
    %1 = vector.shape_cast %0 : vector<1x512x81xbf16> to vector<512x81xbf16>
    %c0_2 = arith.constant 0 : index
    %c0_3 = arith.constant 0 : index
    %2 = vector.load %arg3[%c0_2, %c0_3] : memref<81x192xbf16, #tpu.memory_space<vmem>>, vector<81x192xbf16>
    %cst = arith.constant dense<0.000000e+00> : vector<512x192xf32>
    %3 = tpu.matmul %1, %2, %cst {dimension_numbers = #tpu.dot_dimension_numbers<[1], [0], [0], [1], [0, 0, 1, 1], [], []>} : vector<512x81xbf16>, vector<81x192xbf16>, vector<512x192xf32> -> vector<512x192xf32>
    %c0_4 = arith.constant 0 : index
    %c0_5 = arith.constant 0 : index
    %4 = vector.load %arg4[%c0_4, %c0_5] : memref<1x192xf32, #tpu.memory_space<vmem>>, vector<1x192xf32>
    %5 = vector.broadcast %4 : vector<1x192xf32> to vector<512x192xf32>
    %6 = arith.addf %3, %5 : vector<512x192xf32>
    %cst_6 = arith.constant 0.000000e+00 : f32
    %7 = vector.broadcast %cst_6 : f32 to vector<512x192xf32>
    %8 = arith.maximumf %6, %7 : vector<512x192xf32>
    %9 = arith.truncf %8 : vector<512x192xf32> to vector<512x192xbf16>
    %c0_7 = arith.constant 0 : index
    %c0_8 = arith.constant 0 : index
    %10 = vector.load %arg5[%c0_7, %c0_8] : memref<192x64xbf16, #tpu.memory_space<vmem>>, vector<192x64xbf16>
    %cst_9 = arith.constant dense<0.000000e+00> : vector<512x64xf32>
    %11 = tpu.matmul %9, %10, %cst_9 {dimension_numbers = #tpu.dot_dimension_numbers<[1], [0], [0], [1], [0, 0, 1, 1], [], []>} : vector<512x192xbf16>, vector<192x64xbf16>, vector<512x64xf32> -> vector<512x64xf32>
    %c0_10 = arith.constant 0 : index
    %c0_11 = arith.constant 0 : index
    %12 = vector.load %arg6[%c0_10, %c0_11] : memref<1x64xf32, #tpu.memory_space<vmem>>, vector<1x64xf32>
    %13 = vector.broadcast %12 : vector<1x64xf32> to vector<512x64xf32>
    %14 = arith.addf %11, %13 : vector<512x64xf32>
    %cst_12 = arith.constant 0.000000e+00 : f32
    %15 = vector.broadcast %cst_12 : f32 to vector<512x64xf32>
    %16 = arith.maximumf %14, %15 : vector<512x64xf32>
    %17 = arith.truncf %16 : vector<512x64xf32> to vector<512x64xbf16>
    %c0_13 = arith.constant 0 : index
    %c0_14 = arith.constant 0 : index
    %18 = vector.load %arg7[%c0_13, %c0_14] : memref<2x64xbf16, #tpu.memory_space<vmem>>, vector<2x64xbf16>
    %cst_15 = arith.constant dense<0.000000e+00> : vector<2x512xf32>
    %19 = tpu.matmul %18, %17, %cst_15 {dimension_numbers = #tpu.dot_dimension_numbers<[1], [1], [0], [0], [0, 0, 1, 0], [], []>} : vector<2x64xbf16>, vector<512x64xbf16>, vector<2x512xf32> -> vector<2x512xf32>
    %c0_16 = arith.constant 0 : index
    %c0_17 = arith.constant 0 : index
    %20 = vector.load %arg8[%c0_16, %c0_17] : memref<2x1xf32, #tpu.memory_space<vmem>>, vector<2x1xf32>
    %21 = vector.broadcast %20 : vector<2x1xf32> to vector<2x512xf32>
    %22 = arith.addf %19, %21 : vector<2x512xf32>
    %c0_18 = arith.constant 0 : index
    %c0_19 = arith.constant 0 : index
    %c0_20 = arith.constant 0 : index
    %23 = vector.load %arg9[%c0_18, %c0_19, %c0_20] : memref<1x2x512xf32, #tpu.memory_space<vmem>>, vector<1x2x512xf32>
    %24 = vector.shape_cast %23 : vector<1x2x512xf32> to vector<2x512xf32>
    %25 = vector.shape_cast %22 : vector<2x512xf32> to vector<1x2x512xf32>
    tpu.vector_store %arg9[%c0_18, %c0_19, %c0_20], %25 {strides = array<i32>} : memref<1x2x512xf32, #tpu.memory_space<vmem>>, vector<1x2x512xf32>,
    return
  }
  func.func @transform_0(%arg0: i32, %arg1: i32) -> (i32, i32, i32) {
    %c0_i32 = arith.constant 0 : i32
    %c0_i32_0 = arith.constant 0 : i32
    return %arg0, %arg1, %c0_i32 : i32, i32, i32
  }
  func.func @transform_1(%arg0: i32, %arg1: i32) -> (i32, i32) {
    %c0_i32 = arith.constant 0 : i32
    %c0_i32_0 = arith.constant 0 : i32
    %c0_i32_1 = arith.constant 0 : i32
    return %c0_i32, %c0_i32_0 : i32, i32
  }
  func.func @transform_2(%arg0: i32, %arg1: i32) -> (i32, i32) {
    %c0_i32 = arith.constant 0 : i32
    %c0_i32_0 = arith.constant 0 : i32
    %c0_i32_1 = arith.constant 0 : i32
    return %c0_i32, %c0_i32_0 : i32, i32
  }
  func.func @transform_3(%arg0: i32, %arg1: i32) -> (i32, i32) {
    %c0_i32 = arith.constant 0 : i32
    %c0_i32_0 = arith.constant 0 : i32
    %c0_i32_1 = arith.constant 0 : i32
    return %c0_i32, %c0_i32_0 : i32, i32
  }
  func.func @transform_4(%arg0: i32, %arg1: i32) -> (i32, i32) {
    %c0_i32 = arith.constant 0 : i32
    %c0_i32_0 = arith.constant 0 : i32
    %c0_i32_1 = arith.constant 0 : i32
    return %c0_i32, %c0_i32_0 : i32, i32
  }
  func.func @transform_5(%arg0: i32, %arg1: i32) -> (i32, i32) {
    %c0_i32 = arith.constant 0 : i32
    %c0_i32_0 = arith.constant 0 : i32
    %c0_i32_1 = arith.constant 0 : i32
    return %c0_i32, %c0_i32_0 : i32, i32
  }
  func.func @transform_6(%arg0: i32, %arg1: i32) -> (i32, i32) {
    %c0_i32 = arith.constant 0 : i32
    %c0_i32_0 = arith.constant 0 : i32
    %c0_i32_1 = arith.constant 0 : i32
    return %c0_i32, %c0_i32_0 : i32, i32
  }
  func.func @transform_7(%arg0: i32, %arg1: i32) -> (i32, i32, i32) {
    %c0_i32 = arith.constant 0 : i32
    %c0_i32_0 = arith.constant 0 : i32
    return %arg0, %c0_i32, %arg1 : i32, i32, i32
  }
}

</mosaic_0001>

<bundles_post_ra>
// kernel: tpu_custom_call.1
= control target key start
LH: loop header
LB: loop body
LE: loop exit
PB: predicated region body
PF: predicated region fallthrough
CT: control target
= control target key end

     0   :  { %12 = vsyncpa [#allocation3], 0  ;;  %s3213_s0 = inlined_call_operand.vmem [shape: bf16[2,512,81], index: 0, kind: input, shape index: {}]   ;;  %s3214_s1 = inlined_call_operand.vmem [shape: bf16[81,192], index: 1, kind: input, shape index: {}]   ;;  %s3215_s2 = inlined_call_operand.vmem [shape: f32[1,192], index: 2, kind: input, shape index: {}]   ;;  %s3216_s3 = inlined_call_operand.vmem [shape: bf16[192,64], index: 3, kind: input, shape index: {}]   ;;  %s3217_s4 = inlined_call_operand.vmem [shape: f32[1,64], index: 4, kind: input, shape index: {}]   ;;  %s3218_s5 = inlined_call_operand.vmem [shape: bf16[2,64], index: 5, kind: input, shape index: {}]   ;;  %s3219_s6 = inlined_call_operand.vmem [shape: f32[2,1], index: 6, kind: input, shape index: {}]   ;;  %s3220_s7 = inlined_call_operand.hbm [shape: f32[2,2,512], index: 7, kind: output, shape index: {}]  }
   0x1   :  { %14 = vsyncpa [#allocation3 + $0x1], 0  ;;  %s2583_s24 = smov 0   ;;  %s2585_s25 = smov 0  }
   0x2   :  { %s2587_s26 = smov 0   ;;  %s2589_s27 = smov 0  }
   0x3   :  { %s2591_s28 = smov 0   ;;  %s2593_s29 = smov 0  }
   0x4 LB: > { %s2151_s30 = sadd.s32 4294967295, %s2538_s29   ;;  %s2152_s8 = sadd.s32 4294967294, %s2538_s29   ;;  %s2538_s29 = sphi %s2593_s29, %s20_s29   ;;  %s2534_s28 = sphi %s2591_s28, %s3227_s28   ;;  %s2530_s27 = sphi %s2589_s27, %s3226_s27   ;;  %s2526_s26 = sphi %s2587_s26, %s3225_s26   ;;  %s2522_s25 = sphi %s2585_s25, %s3224_s25   ;;  %s2518_s24 = sphi %s2583_s24, %s3223_s24  }
   0x5   : > { %s32_s9 = sadd.s32 1, %s2534_s28  ;;  %s195_s10 = sadd.s32 1, %s2526_s26 }
   0x6   : > { %p34_p0 = scmp.ge.s32.totalorder %s32_s9, 2  ;;  %p205_p1 = scmp.ne.s32.totalorder %s2526_s26, %s2522_s25 }
   0x7   : > { %p206_p2 = scmp.eq.s32.totalorder %s2151_s30, 1  ;;  %p211_p3 = scmp.ne.s32.totalorder %s2522_s25, %s2518_s24 }
   0x8   : > { %s3229_s9 = smov (%p34_p0, %s32_s9), 0  ;;  %p212_p5 = scmp.eq.s32.totalorder %s2152_s8, 1 }
   0x9   : > { %p2623_p4 = por %p206_p2, %p205_p1  ;;  %s190_s12 = ssub.s32 %s2534_s28, %s3229_s9 }
   0xa   : > { %p2155_p6 = scmp.ge.s32.totalorder %s2538_s29, 1  ;;  %p193_p7 = scmp.eq.s32.totalorder %s190_s12, 0 }
   0xb   : > { %p2630_p8 = por %p212_p5, %p211_p3  ;;  %p261_p9 = scmp.lt.s32.totalorder %s2538_s29, 3 }
   0xc   : > { %s2636_s14 = scalar_select %p193_p7, %s2526_s26, %s195_s10  }
   0xd   : > { %p262_p10 = pnand %p2155_p6, %p261_p9 }
   0xe   : > { %v2399_v0 = vld [vmem:[%s3214_s1 + $0x4] ss:$8 sps:$4 sm:$0xff] (!%p262_p10)   ;;  %v2401_v1 = vld [vmem:[%s3214_s1] ss:$8 sps:$4 sm:$0xff] (!%p262_p10)   ;;  %v2540_v2 = vmov (!%p262_p10), 0   ;;  %p298_p11 = scmp.lt.s32.totalorder (!%p262_p10), %s2530_s27, 1  ;;  %v386_v55 = vlaneseq (!%p262_p10) }
   0xf   : > { %265 = sbr.rel (%p262_p10) target bundleno = 973 (0x3cd), region = 48  ;;  %749 = vmatprep.mubr.bf16.mxu0 (!%p262_p10), %v2540_v2  ;;  %1462 = vmatprep.subr.bf16.mxu1 (!%p262_p10), %v2540_v2  ;;  %v2402_v3 = vld [vmem:[%s3214_s1 + $0x14] ss:$8 sps:$4 sm:$0xff] (!%p262_p10)   ;;  %v2404_v4 = vld [vmem:[%s3214_s1 + $0x10] ss:$8 sps:$4 sm:$0xff] (!%p262_p10)   ;;  %vm708_vm0 = vcmask (!%p262_p10), 1040384  }
  0x10   : > { %717 = vmatprep.subr.bf16.mxu0 (!%p262_p10), %v2399_v0  ;;  %2398 = vset.pattern.permute.xlu0 (!%p262_p10), %v2540_v2  ;;  %v2405_v5 = vld [vmem:[%s3214_s1 + $0x24] ss:$8 sps:$4 sm:$0xff] (!%p262_p10)   ;;  %v2407_v6 = vld [vmem:[%s3214_s1 + $0x20] ss:$8 sps:$4 sm:$0xff] (!%p262_p10)   ;;  %v2408_v7 = vld [vmem:[%s3214_s1 + $0x34] ss:$8 sps:$4 sm:$0xff] (!%p262_p10)  }
  0x11   : > { %718 = vmatpush1.bf16.msra.mxu0 (!%p262_p10), %v2401_v1  ;;  %v383_v8 = vld [vmem:[%s3214_s1 + $0x50] sm:$0x11] (!%p262_p10)  ;;  %v2411_v10 = vld [vmem:[%s3214_s1 + $0x44] ss:$8 sps:$4 sm:$0xff] (!%p262_p10)   ;;  %v710_v12 = vsel (!%p262_p10), %vm708_vm0, 65535, %v2540_v2  ;;  %vm611_vm1 = vcmask (!%p262_p10), 662528  }
  0x12   : > { %719 = vmatprep.subr.bf16.mxu0 (!%p262_p10), %v2402_v3  ;;  %v2410_v9 = vld [vmem:[%s3214_s1 + $0x30] ss:$8 sps:$4 sm:$0xff] (!%p262_p10)   ;;  %v2202_v11 = vcombine.high (!%p262_p10), %v383_v8, %v383_v8  ;;  %v2413_v13 = vld [vmem:[%s3214_s1 + $0x40] ss:$8 sps:$4 sm:$0xff] (!%p262_p10)   ;;  %v2201_v14 = vcombine.low (!%p262_p10), %v383_v8, %v383_v8  ;;  %v2806_v56 = vshrl.u32 (!%p262_p10), %v386_v55, 7  ;;  %vm1365_vm2 = vcmask (!%p262_p10), 523264  }
  0x13   : > { %v2438_v23 = vld [vmem:[%s3216_s3] sm:$0xff] (!%p262_p10)   ;;  %v2440_v25 = vld [vmem:[%s3216_s3 + $0x8] sm:$0xff] (!%p262_p10)   ;;  %v2441_v26 = vld [vmem:[%s3216_s3 + $0x10] sm:$0xff] (!%p262_p10)   ;;  %s294_s30 = sand.u32 (!%p262_p10), 1, %s2522_s25  }
  0x14   : > { %v715_v15 = vand.u32 (!%p262_p10), %v2202_v11, %v710_v12  ;;  %v712_v16 = vand.u32 (!%p262_p10), %v2201_v14, %v710_v12  ;;  %1463 = vmatpush1.bf16.msra.mxu1 (!%p262_p10), %v2438_v23  ;;  %v2443_v28 = vld [vmem:[%s3216_s3 + $0x18] sm:$0xff] (!%p262_p10)   ;;  %v2444_v29 = vld [vmem:[%s3216_s3 + $0x20] sm:$0xff] (!%p262_p10)   ;;  %v2446_v31 = vld [vmem:[%s3216_s3 + $0x28] sm:$0xff] (!%p262_p10)   ;;  %v388_v58 = vsub.s32 (!%p262_p10), 0, %v2806_v56  ;;  %v392_v60 = vsub.s32 (!%p262_p10), 1, %v2806_v56  ;;  %s2156_s8 = sshll.u32 (!%p262_p10), %s294_s30, 3 }
  0x15   : > { %720 = vmatpush1.bf16.msra.mxu0 (!%p262_p10), %v2404_v4  ;;  %1464 = vmatprep.subr.bf16.mxu1 (!%p262_p10), %v2540_v2  ;;  %v2447_v32 = vld [vmem:[%s3216_s3 + $0x30] sm:$0xff] (!%p262_p10)   ;;  %v2449_v34 = vld [vmem:[%s3216_s3 + $0x38] sm:$0xff] (!%p262_p10)   ;;  %v2450_v35 = vld [vmem:[%s3216_s3 + $0x40] sm:$0xff] (!%p262_p10)   ;;  %s296_s12 = scalar_lea.vmem (!%p262_p10), [#allocation2], %s2156_s8  ;;  %s2059_s19 = scalar_lea.sflag (!%p262_p10), [#allocation3], %s294_s30 }
  0x16   : > { %s299_s23 = scalar_select %p298_p11, %s2530_s27, 1  ;;  %721 = vmatprep.subr.bf16.mxu0 %v2405_v5  ;;  %v2452_v37 = vld [vmem:[%s3216_s3 + $0x48] sm:$0xff]   ;;  %v2453_v39 = vld [vmem:[%s3216_s3 + $0x50] sm:$0xff]   ;;  %v2455_v40 = vld [vmem:[%s3216_s3 + $0x58] sm:$0xff]  }
  0x17   : > { %v384_v59 = vld [vmem:[%s3215_s2] sm:$0x3]  ;;  %s2075_s15 = sshll.u32 %s296_s12, 4  ;;  %s3168_s15 = int_to_ptr.vmem [resolvable:$true] %s2075_s15 }
  0x18   : > { %s2287_s10 = sshll.u32 %s299_s23, 8  ;;  %1465 = vmatpush1.bf16.msra.mxu1 %v2440_v25  ;;  %v2816_v61 = vrot.slane %v384_v59, %v388_v58  ;;  %v2818_v62 = vrot.slane %v384_v59, %v392_v60  ;;  %s2460_s20 = scalar_lea.vmem %s3168_s15, 128 }
  0x19   : > { %s2661_s16 = scalar_lea.vmem %s3213_s0, %s2287_s10  ;;  %722 = vmatpush1.bf16.msra.mxu0 %v2407_v6  ;;  %1466 = vmatprep.subr.bf16.mxu1 %v2540_v2  ;;  %s2288_s10 = sshll.u32 %s2530_s27, 7 }
  0x1a   : > { %723 = vmatprep.subr.bf16.mxu0 %v2408_v7  ;;  %v2416_v17 = vld [vmem:[%s2661_s16] sm:$0xff]   ;;  %v2417_v18 = vld [vmem:[%s2661_s16 + $0x8] sm:$0xff]   ;;  %v2418_v19 = vld [vmem:[%s2661_s16 + $0x10] sm:$0xff]   ;;  %p2461_p12 = scmp.ne.s32.totalorder %s3168_s15, %s2460_s20  ;;  %s2542_s27 = smov [#allocation2]  }
  0x1b   : > { %v2419_v20 = vld [vmem:[%s2661_s16 + $0x18] sm:$0xff]   ;;  %v2420_v21 = vld [vmem:[%s2661_s16 + $0x20] sm:$0xff]   ;;  %v2421_v22 = vld [vmem:[%s2661_s16 + $0x28] sm:$0xff]   ;;  %s2464_s21 = sshll.u32 %s2542_s27, 4  ;;  %s2465_s21 = int_to_ptr.vmem [resolvable:$false] %s2464_s21 }
  0x1c   : > { %v2422_v24 = vld [vmem:[%s2661_s16 + $0x30] sm:$0xff]   ;;  %v2423_v27 = vld [vmem:[%s2661_s16 + $0x38] sm:$0xff]   ;;  %1467 = vmatpush1.bf16.msra.mxu1 %v2441_v26  ;;  %v2424_v30 = vld [vmem:[%s2661_s16 + $0x40] sm:$0xff]   ;;  %p2462_p13 = pnand %p2461_p12, %p2623_p4  ;;  %s2466_s22 = scalar_lea.vmem %s2465_s21, 256 }
  0x1d   : > { %724 = vmatpush1.bf16.msra.mxu0 %v2410_v9  ;;  %1468 = vmatprep.subr.bf16.mxu1 %v2540_v2  ;;  %v2425_v33 = vld [vmem:[%s2661_s16 + $0x48] sm:$0xff]   ;;  %v2426_v36 = vld [vmem:[%s2661_s16 + $0x50] sm:$0xff]   ;;  %v2427_v38 = vld [vmem:[%s2661_s16 + $0x58] sm:$0xff]   ;;  %p2467_p1 = scmp.lt.s32.totalorder %s3168_s15, %s2465_s21  ;;  %p2468_p2 = scmp.lt.s32.totalorder %s2466_s22, %s2460_s20 }
  0x1e   : > { %725 = vmatprep.subr.bf16.mxu0 %v2411_v10  ;;  %v2428_v41 = vld [vmem:[%s2661_s16 + $0x60] sm:$0xff]   ;;  %v2429_v42 = vld [vmem:[%s2661_s16 + $0x68] sm:$0xff]   ;;  %v2430_v43 = vld [vmem:[%s2661_s16 + $0x70] sm:$0xff]   ;;  %p2463_p0 = pneg %p2462_p13 }
  0x1f   : > { %v2431_v44 = vld [vmem:[%s2661_s16 + $0x78] sm:$0xff]   ;;  %v2432_v45 = vld [vmem:[%s2661_s16 + $0x80] sm:$0xff]   ;;  %v2433_v46 = vld [vmem:[%s2661_s16 + $0x88] sm:$0xff]   ;;  %p2469_p3 = por %p2468_p2, %p2467_p1 }
  0x20   : > { %1469 = vmatpush1.bf16.msra.mxu1 %v2443_v28  ;;  %v2434_v47 = vld [vmem:[%s2661_s16 + $0x90] sm:$0xff]   ;;  %v2435_v48 = vld [vmem:[%s2661_s16 + $0x98] sm:$0xff]   ;;  %v2436_v49 = vld [vmem:[%s2661_s16 + $0xa0] sm:$0xff]  }
  0x21   : > { %726 = vmatpush1.bf16.msra.mxu0 %v2413_v13  ;;  %1470 = vmatprep.subr.bf16.mxu1 %v2540_v2  ;;  %v2437_v50 = vld [vmem:[%s2661_s16 + $0xa8] sm:$0xff]   ;;  %v2439_v51 = vld [vmem:[%s2661_s16 + $0xb0] sm:$0xff]   ;;  %v2442_v52 = vld [vmem:[%s2661_s16 + $0xb8] sm:$0xff]   ;;  %p2470_p5 = pnand %p2469_p3, %p2463_p0 }
  0x22   : > { %727 = vmatprep.subr.bf16.mxu0 %v715_v15  ;;  %v2445_v53 = vld [vmem:[%s2661_s16 + $0xc0] sm:$0xff]   ;;  %v2448_v54 = vld [vmem:[%s2661_s16 + $0xc8] sm:$0xff]   ;;  %v2451_v57 = vld [vmem:[%s2661_s16 + $0xd0] sm:$0xff]  }
  0x23   : > { %v2454_v3 = vld [vmem:[%s2661_s16 + $0xd8] sm:$0xff]  }
  0x24   : > { %1471 = vmatpush1.bf16.msra.mxu1 %v2444_v29 }
  0x25   : > { %728 = vmatpush1.bf16.msra.mxu0 %v712_v16  ;;  %1472 = vmatprep.subr.bf16.mxu1 %v2540_v2 }
  0x28   : > { %2203 = vmatmul.mubr.msk.bf16.vlgmr.msra.gmra.mrb[0].mxu0 %vm611_vm1, %v2416_v17  ;;  %1473 = vmatpush1.bf16.msra.mxu1 %v2446_v31 }
  0x29   : > { %759 = vmatprep.mubr.bf16.mxu0 %v2540_v2  ;;  %1474 = vmatprep.subr.bf16.mxu1 %v2540_v2 }
  0x2c   : > { %1475 = vmatpush1.bf16.msra.mxu1 %v2447_v32 }
  0x2d   : > { %1476 = vmatprep.subr.bf16.mxu1 %v2540_v2 }
  0x30   : > { %2204 = vmatmul.mubr.msk.bf16.gmra.mrb[4].mxu0 %vm611_vm1, %v2417_v18  ;;  %1477 = vmatpush1.bf16.msra.mxu1 %v2449_v34  ;;  %v2456_v18 = vld [vmem:[%s2661_s16 + $0xe0] sm:$0xff]  }
  0x31   : > { %769 = vmatprep.mubr.bf16.mxu0 %v2540_v2  ;;  %1478 = vmatprep.subr.bf16.mxu1 %v2540_v2 }
  0x34   : > { %1479 = vmatpush1.bf16.msra.mxu1 %v2450_v35 }
  0x35   : > { %1480 = vmatprep.subr.bf16.mxu1 %v2540_v2 }
  0x38   : > { %2205 = vmatmul.mubr.msk.bf16.gmra.mrb[8].mxu0 %vm611_vm1, %v2418_v19  ;;  %1481 = vmatpush1.bf16.msra.mxu1 %v2452_v37 }
  0x39   : > { %779 = vmatprep.mubr.bf16.mxu0 %v2540_v2  ;;  %1482 = vmatprep.subr.bf16.mxu1 %v2540_v2 }
  0x3c   : > { %1483 = vmatpush1.bf16.msra.mxu1 %v2453_v39 }
  0x3d   : > { %1484 = vmatprep.subr.bf16.mxu1 %v2540_v2 }
  0x40   : > { %2206 = vmatmul.mubr.msk.bf16.gmra.mrb[12].mxu0 %vm611_vm1, %v2419_v20  ;;  %1485 = vmatpush1.bf16.msra.mxu1 %v2455_v40 }
  0x41   : > { %789 = vmatprep.mubr.bf16.mxu0 %v2540_v2 }
  0x48   : > { %2207 = vmatmul.mubr.msk.bf16.gmra.mrb[16].mxu0 %vm611_vm1, %v2420_v21 }
  0x49   : > { %799 = vmatprep.mubr.bf16.mxu0 %v2540_v2 }
  0x50   : > { %2208 = vmatmul.mubr.msk.bf16.gmra.mrb[20].mxu0 %vm611_vm1, %v2421_v22 }
  0x51   : > { %809 = vmatprep.mubr.bf16.mxu0 %v2540_v2 }
  0x58   : > { %2209 = vmatmul.mubr.msk.bf16.gmra.mrb[24].mxu0 %vm611_vm1, %v2422_v24 }
  0x59   : > { %819 = vmatprep.mubr.bf16.mxu0 %v2540_v2 }
  0x60   : > { %2210 = vmatmul.mubr.msk.bf16.gmra.mrb[28].mxu0 %vm611_vm1, %v2423_v27 }
  0x61   : > { %829 = vmatprep.mubr.bf16.mxu0 %v2540_v2 }
  0x68   : > { %2211 = vmatmul.mubr.msk.bf16.gmra.mrb[32].mxu0 %vm611_vm1, %v2424_v30 }
  0x69   : > { %839 = vmatprep.mubr.bf16.mxu0 %v2540_v2 }
  0x70   : > { %2212 = vmatmul.mubr.msk.bf16.gmra.mrb[36].mxu0 %vm611_vm1, %v2425_v33  ;;  %v2457_v33 = vld [vmem:[%s2661_s16 + $0xe8] sm:$0xff]  }
  0x71   : > { %849 = vmatprep.mubr.bf16.mxu0 %v2540_v2 }
  0x78   : > { %2213 = vmatmul.mubr.msk.bf16.gmra.mrb[40].mxu0 %vm611_vm1, %v2426_v36 }
  0x79   : > { %859 = vmatprep.mubr.bf16.mxu0 %v2540_v2 }
  0x80   : > { %2214 = vmatmul.mubr.msk.bf16.gmra.mrb[44].mxu0 %vm611_vm1, %v2427_v38 }
  0x81   : > { %869 = vmatprep.mubr.bf16.mxu0 %v2540_v2 }
  0x88   : > { %2215 = vmatmul.mubr.msk.bf16.gmra.mrb[48].mxu0 %vm611_vm1, %v2428_v41 }
  0x89   : > { %879 = vmatprep.mubr.bf16.mxu0 %v2540_v2 }
  0x90   : > { %2216 = vmatmul.mubr.msk.bf16.gmra.mrb[52].mxu0 %vm611_vm1, %v2429_v42 }
  0x91   : > { %889 = vmatprep.mubr.bf16.mxu0 %v2540_v2 }
  0x98   : > { %2217 = vmatmul.mubr.msk.bf16.gmra.mrb[56].mxu0 %vm611_vm1, %v2430_v43 }
  0x99   : > { %899 = vmatprep.mubr.bf16.mxu0 %v2540_v2 }
  0xa0   : > { %2218 = vmatmul.mubr.msk.bf16.gmra.mrb[60].mxu0 %vm611_vm1, %v2431_v44 }
  0xa1   : > { %909 = vmatprep.mubr.bf16.mxu0 %v2540_v2 }
  0xa8   : > { %2219 = vmatmul.mubr.msk.bf16.gmra.mrb[64].mxu0 %vm611_vm1, %v2432_v45 }
  0xa9   : > { %919 = vmatprep.mubr.bf16.mxu0 %v2540_v2 }
  0xb0   : > { %2220 = vmatmul.mubr.msk.bf16.gmra.mrb[68].mxu0 %vm611_vm1, %v2433_v46 }
  0xb1   : > { %929 = vmatprep.mubr.bf16.mxu0 %v2540_v2 }
  0xb8   : > { %2221 = vmatmul.mubr.msk.bf16.gmra.mrb[72].mxu0 %vm611_vm1, %v2434_v47 }
  0xb9   : > { %939 = vmatprep.mubr.bf16.mxu0 %v2540_v2 }
  0xc0   : > { %2222 = vmatmul.mubr.msk.bf16.gmra.mrb[76].mxu0 %vm611_vm1, %v2435_v48  ;;  %v2458_v48 = vld [vmem:[%s2661_s16 + $0xf0] sm:$0xff]  }
  0xc1   : > { %949 = vmatprep.mubr.bf16.mxu0 %v2540_v2 }
  0xc8   : > { %2223 = vmatmul.mubr.msk.bf16.gmra.mrb[80].mxu0 %vm611_vm1, %v2436_v49 }
  0xc9   : > { %959 = vmatprep.mubr.bf16.mxu0 %v2540_v2 }
  0xd0   : > { %2224 = vmatmul.mubr.msk.bf16.gmra.mrb[84].mxu0 %vm611_vm1, %v2437_v50 }
  0xd1   : > { %969 = vmatprep.mubr.bf16.mxu0 %v2540_v2 }
  0xd8   : > { %2225 = vmatmul.mubr.msk.bf16.gmra.mrb[88].mxu0 %vm611_vm1, %v2439_v51 }
  0xd9   : > { %979 = vmatprep.mubr.bf16.mxu0 %v2540_v2 }
  0xe0   : > { %2226 = vmatmul.mubr.msk.bf16.gmra.mrb[92].mxu0 %vm611_vm1, %v2442_v52 }
  0xe1   : > { %989 = vmatprep.mubr.bf16.mxu0 %v2540_v2 }
  0xe8   : > { %2227 = vmatmul.mubr.msk.bf16.gmra.mrb[96].mxu0 %vm611_vm1, %v2445_v53 }
  0xe9   : > { %999 = vmatprep.mubr.bf16.mxu0 %v2540_v2 }
  0xf0   : > { %2228 = vmatmul.mubr.msk.bf16.gmra.mrb[100].mxu0 %vm611_vm1, %v2448_v54 }
  0xf1   : > { %1009 = vmatprep.mubr.bf16.mxu0 %v2540_v2 }
  0xf8   : > { %2229 = vmatmul.mubr.msk.bf16.gmra.mrb[104].mxu0 %vm611_vm1, %v2451_v57 }
  0xf9   : > { %1019 = vmatprep.mubr.bf16.mxu0 %v2540_v2 }
  0xfb   : > { %v751_v63 = vpop.f32.mrb[0].mxu0 }
  0xfc   : > { %v752_v0 = vadd.f32 %v751_v63, %v2816_v61  ;;  %v753_v1 = vpop.f32.mrb[1].mxu0 }
  0xfd   : > { %v754_v4 = vadd.f32 %v753_v1, %v2818_v62  ;;  %v755_v5 = vpop.f32.mrb[2].mxu0 }
  0xfe   : > { %v756_v6 = vadd.f32 %v755_v5, %v2816_v61  ;;  %v757_v7 = vpop.f32.mrb[3].mxu0  ;;  %v1070_v9 = vmax.f32 %v752_v0, 0.0 }
  0xff   : > { %v758_v8 = vadd.f32 %v757_v7, %v2818_v62  ;;  %v1071_v11 = vmax.f32 %v754_v4, 0.0 }
 0x100   : > { %v1072_v10 = vmax.f32 %v756_v6, 0.0  ;;  %2230 = vmatmul.mubr.msk.bf16.gmra.mrb[108].mxu0 %vm611_vm1, %v2454_v3  ;;  %v2459_v3 = vld [vmem:[%s2661_s16 + $0xf8] sm:$0xff]   ;;  %s3166_s16 = scalar_lea.hbm %s3220_s7, %s2288_s10 }
 0x101   : > { %v1073_v12 = vmax.f32 %v758_v8, 0.0  ;;  %1029 = vmatprep.mubr.bf16.mxu0 %v2540_v2 }
 0x102   : > { %v1198_v13 = vpack.c.bf16 %v1072_v10, %v1070_v9 }
 0x103   : > { %v761_v14 = vpop.f32.mrb[4].mxu0  ;;  %v1199_v15 = vpack.c.bf16 %v1073_v12, %v1071_v11 }
 0x104   : > { %v762_v16 = vadd.f32 %v761_v14, %v2816_v61  ;;  %v763_v17 = vpop.f32.mrb[5].mxu0 }
 0x105   : > { %v764_v19 = vadd.f32 %v763_v17, %v2818_v62  ;;  %v765_v20 = vpop.f32.mrb[6].mxu0  ;;  %2248 = vmatprep.mubr.msk.bf16.mxu1 %vm1365_vm2, %v1199_v15 }
 0x106   : > { %v766_v21 = vadd.f32 %v765_v20, %v2816_v61  ;;  %v767_v22 = vpop.f32.mrb[7].mxu0  ;;  %1495 = vmatmul.mubr.bf16.vlgmr.msra.gmra.mrb[0].mxu1 %v1198_v13  ;;  %v1074_v24 = vmax.f32 %v762_v16, 0.0 }
 0x107   : > { %v768_v23 = vadd.f32 %v767_v22, %v2818_v62  ;;  %v1075_v26 = vmax.f32 %v764_v19, 0.0 }
 0x108   : > { %v1076_v25 = vmax.f32 %v766_v21, 0.0  ;;  %2231 = vmatmul.mubr.msk.bf16.gmra.mrb[112].mxu0 %vm611_vm1, %v2456_v18 }
 0x109   : > { %v1077_v27 = vmax.f32 %v768_v23, 0.0  ;;  %1039 = vmatprep.mubr.bf16.mxu0 %v2540_v2 }
 0x10a   : > { %v1200_v28 = vpack.c.bf16 %v1076_v25, %v1074_v24 }
 0x10b   : > { %v1201_v29 = vpack.c.bf16 %v1077_v27, %v1075_v26  ;;  %v771_v30 = vpop.f32.mrb[8].mxu0 }
 0x10c   : > { %v772_v31 = vadd.f32 %v771_v30, %v2816_v61  ;;  %v773_v32 = vpop.f32.mrb[9].mxu0 }
 0x10d   : > { %v774_v34 = vadd.f32 %v773_v32, %v2818_v62  ;;  %v775_v35 = vpop.f32.mrb[10].mxu0  ;;  %2249 = vmatprep.mubr.msk.bf16.mxu1 %vm1365_vm2, %v1201_v29 }
 0x10e   : > { %v776_v36 = vadd.f32 %v775_v35, %v2816_v61  ;;  %v777_v37 = vpop.f32.mrb[11].mxu0  ;;  %1503 = vmatmul.mubr.bf16.gmra.mrb[4].mxu1 %v1200_v28  ;;  %v1078_v39 = vmax.f32 %v772_v31, 0.0 }
 0x10f   : > { %v778_v38 = vadd.f32 %v777_v37, %v2818_v62  ;;  %v1079_v41 = vmax.f32 %v774_v34, 0.0 }
 0x110   : > { %v1080_v40 = vmax.f32 %v776_v36, 0.0  ;;  %2232 = vmatmul.mubr.msk.bf16.gmra.mrb[116].mxu0 %vm611_vm1, %v2457_v33 }
 0x111   : > { %v1081_v42 = vmax.f32 %v778_v38, 0.0  ;;  %1049 = vmatprep.mubr.bf16.mxu0 %v2540_v2 }
 0x112   : > { %v1202_v43 = vpack.c.bf16 %v1080_v40, %v1078_v39 }
 0x113   : > { %v1203_v44 = vpack.c.bf16 %v1081_v42, %v1079_v41  ;;  %v781_v45 = vpop.f32.mrb[12].mxu0 }
 0x114   : > { %v782_v46 = vadd.f32 %v781_v45, %v2816_v61  ;;  %v783_v47 = vpop.f32.mrb[13].mxu0 }
 0x115   : > { %v784_v49 = vadd.f32 %v783_v47, %v2818_v62  ;;  %v785_v50 = vpop.f32.mrb[14].mxu0  ;;  %2250 = vmatprep.mubr.msk.bf16.mxu1 %vm1365_vm2, %v1203_v44 }
 0x116   : > { %v786_v51 = vadd.f32 %v785_v50, %v2816_v61  ;;  %v787_v52 = vpop.f32.mrb[15].mxu0  ;;  %1511 = vmatmul.mubr.bf16.gmra.mrb[8].mxu1 %v1202_v43  ;;  %v1082_v54 = vmax.f32 %v782_v46, 0.0 }
 0x117   : > { %v788_v53 = vadd.f32 %v787_v52, %v2818_v62  ;;  %v1083_v57 = vmax.f32 %v784_v49, 0.0 }
 0x118   : > { %v1084_v55 = vmax.f32 %v786_v51, 0.0  ;;  %2233 = vmatmul.mubr.msk.bf16.gmra.mrb[120].mxu0 %vm611_vm1, %v2458_v48 }
 0x119   : > { %v1085_v58 = vmax.f32 %v788_v53, 0.0  ;;  %1059 = vmatprep.mubr.bf16.mxu0 %v2540_v2 }
 0x11a   : > { %v1204_v59 = vpack.c.bf16 %v1084_v55, %v1082_v54 }
 0x11b   : > { %v1205_v60 = vpack.c.bf16 %v1085_v58, %v1083_v57  ;;  %v791_v63 = vpop.f32.mrb[16].mxu0 }
 0x11c   : > { %v792_v0 = vadd.f32 %v791_v63, %v2816_v61  ;;  %v793_v1 = vpop.f32.mrb[17].mxu0 }
 0x11d   : > { %v794_v4 = vadd.f32 %v793_v1, %v2818_v62  ;;  %v795_v5 = vpop.f32.mrb[18].mxu0  ;;  %2251 = vmatprep.mubr.msk.bf16.mxu1 %vm1365_vm2, %v1205_v60 }
 0x11e   : > { %v796_v6 = vadd.f32 %v795_v5, %v2816_v61  ;;  %v797_v7 = vpop.f32.mrb[19].mxu0  ;;  %1519 = vmatmul.mubr.bf16.gmra.mrb[12].mxu1 %v1204_v59  ;;  %v1086_v9 = vmax.f32 %v792_v0, 0.0 }
 0x11f   : > { %v798_v8 = vadd.f32 %v797_v7, %v2818_v62  ;;  %v1087_v10 = vmax.f32 %v794_v4, 0.0 }
 0x120   : > { %v1088_v2 = vmax.f32 %v796_v6, 0.0  ;;  %2234 = vmatmul.mubr.msk.bf16.gmra.mrb[124].mxu0 %vm611_vm1, %v2459_v3 }
 0x121   : > { %v1089_v11 = vmax.f32 %v798_v8, 0.0 }
 0x122   : > { %v1206_v12 = vpack.c.bf16 %v1088_v2, %v1086_v9 }
 0x123   : > { %v1207_v13 = vpack.c.bf16 %v1089_v11, %v1087_v10  ;;  %v801_v14 = vpop.f32.mrb[20].mxu0 }
 0x124   : > { %v802_v15 = vadd.f32 %v801_v14, %v2816_v61  ;;  %v803_v16 = vpop.f32.mrb[21].mxu0 }
 0x125   : > { %v804_v17 = vadd.f32 %v803_v16, %v2818_v62  ;;  %v805_v18 = vpop.f32.mrb[22].mxu0  ;;  %2252 = vmatprep.mubr.msk.bf16.mxu1 %vm1365_vm2, %v1207_v13 }
 0x126   : > { %v806_v19 = vadd.f32 %v805_v18, %v2816_v61  ;;  %v807_v20 = vpop.f32.mrb[23].mxu0  ;;  %1527 = vmatmul.mubr.bf16.gmra.mrb[16].mxu1 %v1206_v12  ;;  %v1090_v22 = vmax.f32 %v802_v15, 0.0 }
 0x127   : > { %v808_v21 = vadd.f32 %v807_v20, %v2818_v62  ;;  %v1091_v24 = vmax.f32 %v804_v17, 0.0 }
 0x128   : > { %v1092_v23 = vmax.f32 %v806_v19, 0.0 }
 0x129   : > { %v1093_v25 = vmax.f32 %v808_v21, 0.0 }
 0x12a   : > { %v1208_v26 = vpack.c.bf16 %v1092_v23, %v1090_v22 }
 0x12b   : > { %v1209_v27 = vpack.c.bf16 %v1093_v25, %v1091_v24  ;;  %v811_v28 = vpop.f32.mrb[24].mxu0 }
 0x12c   : > { %v812_v29 = vadd.f32 %v811_v28, %v2816_v61  ;;  %v813_v30 = vpop.f32.mrb[25].mxu0 }
 0x12d   : > { %v814_v31 = vadd.f32 %v813_v30, %v2818_v62  ;;  %v815_v32 = vpop.f32.mrb[26].mxu0  ;;  %2253 = vmatprep.mubr.msk.bf16.mxu1 %vm1365_vm2, %v1209_v27 }
 0x12e   : > { %v816_v33 = vadd.f32 %v815_v32, %v2816_v61  ;;  %v817_v34 = vpop.f32.mrb[27].mxu0  ;;  %1535 = vmatmul.mubr.bf16.gmra.mrb[20].mxu1 %v1208_v26  ;;  %v1094_v36 = vmax.f32 %v812_v29, 0.0 }
 0x12f   : > { %v818_v35 = vadd.f32 %v817_v34, %v2818_v62  ;;  %v1095_v38 = vmax.f32 %v814_v31, 0.0 }
 0x130   : > { %v1096_v37 = vmax.f32 %v816_v33, 0.0 }
 0x131   : > { %v1097_v39 = vmax.f32 %v818_v35, 0.0 }
 0x132   : > { %v1210_v40 = vpack.c.bf16 %v1096_v37, %v1094_v36 }
 0x133   : > { %v1211_v41 = vpack.c.bf16 %v1097_v39, %v1095_v38  ;;  %v821_v42 = vpop.f32.mrb[28].mxu0 }
 0x134   : > { %v822_v43 = vadd.f32 %v821_v42, %v2816_v61  ;;  %v823_v44 = vpop.f32.mrb[29].mxu0 }
 0x135   : > { %v824_v45 = vadd.f32 %v823_v44, %v2818_v62  ;;  %v825_v46 = vpop.f32.mrb[30].mxu0  ;;  %2254 = vmatprep.mubr.msk.bf16.mxu1 %vm1365_vm2, %v1211_v41 }
 0x136   : > { %v826_v47 = vadd.f32 %v825_v46, %v2816_v61  ;;  %v827_v48 = vpop.f32.mrb[31].mxu0  ;;  %1543 = vmatmul.mubr.bf16.gmra.mrb[24].mxu1 %v1210_v40  ;;  %v1098_v50 = vmax.f32 %v822_v43, 0.0 }
 0x137   : > { %v828_v49 = vadd.f32 %v827_v48, %v2818_v62  ;;  %v1099_v52 = vmax.f32 %v824_v45, 0.0 }
 0x138   : > { %v1100_v51 = vmax.f32 %v826_v47, 0.0 }
 0x139   : > { %v1101_v53 = vmax.f32 %v828_v49, 0.0 }
 0x13a   : > { %v1212_v54 = vpack.c.bf16 %v1100_v51, %v1098_v50 }
 0x13b   : > { %v1213_v55 = vpack.c.bf16 %v1101_v53, %v1099_v52  ;;  %v831_v57 = vpop.f32.mrb[32].mxu0 }
 0x13c   : > { %v832_v58 = vadd.f32 %v831_v57, %v2816_v61  ;;  %v833_v59 = vpop.f32.mrb[33].mxu0 }
 0x13d   : > { %v834_v60 = vadd.f32 %v833_v59, %v2818_v62  ;;  %v835_v63 = vpop.f32.mrb[34].mxu0  ;;  %2255 = vmatprep.mubr.msk.bf16.mxu1 %vm1365_vm2, %v1213_v55 }
 0x13e   : > { %v836_v0 = vadd.f32 %v835_v63, %v2816_v61  ;;  %v837_v1 = vpop.f32.mrb[35].mxu0  ;;  %1551 = vmatmul.mubr.bf16.gmra.mrb[28].mxu1 %v1212_v54  ;;  %v1102_v4 = vmax.f32 %v832_v58, 0.0 }
 0x13f   : > { %v838_v3 = vadd.f32 %v837_v1, %v2818_v62  ;;  %v1103_v6 = vmax.f32 %v834_v60, 0.0 }
 0x140   : > { %v1104_v5 = vmax.f32 %v836_v0, 0.0 }
 0x141   : > { %v1105_v7 = vmax.f32 %v838_v3, 0.0 }
 0x142   : > { %v1214_v8 = vpack.c.bf16 %v1104_v5, %v1102_v4 }
 0x143   : > { %v1215_v9 = vpack.c.bf16 %v1105_v7, %v1103_v6  ;;  %v841_v2 = vpop.f32.mrb[36].mxu0 }
 0x144   : > { %v842_v10 = vadd.f32 %v841_v2, %v2816_v61  ;;  %v843_v11 = vpop.f32.mrb[37].mxu0 }
 0x145   : > { %v844_v12 = vadd.f32 %v843_v11, %v2818_v62  ;;  %v845_v13 = vpop.f32.mrb[38].mxu0  ;;  %2256 = vmatprep.mubr.msk.bf16.mxu1 %vm1365_vm2, %v1215_v9 }
 0x146   : > { %v846_v14 = vadd.f32 %v845_v13, %v2816_v61  ;;  %v847_v15 = vpop.f32.mrb[39].mxu0  ;;  %1559 = vmatmul.mubr.bf16.gmra.mrb[32].mxu1 %v1214_v8  ;;  %v1106_v17 = vmax.f32 %v842_v10, 0.0 }
 0x147   : > { %v848_v16 = vadd.f32 %v847_v15, %v2818_v62  ;;  %v1107_v19 = vmax.f32 %v844_v12, 0.0 }
 0x148   : > { %v1108_v18 = vmax.f32 %v846_v14, 0.0 }
 0x149   : > { %v1109_v20 = vmax.f32 %v848_v16, 0.0 }
 0x14a   : > { %v1216_v21 = vpack.c.bf16 %v1108_v18, %v1106_v17 }
 0x14b   : > { %v1217_v22 = vpack.c.bf16 %v1109_v20, %v1107_v19  ;;  %v851_v23 = vpop.f32.mrb[40].mxu0 }
 0x14c   : > { %v852_v24 = vadd.f32 %v851_v23, %v2816_v61  ;;  %v853_v25 = vpop.f32.mrb[41].mxu0 }
 0x14d   : > { %v854_v26 = vadd.f32 %v853_v25, %v2818_v62  ;;  %v855_v27 = vpop.f32.mrb[42].mxu0  ;;  %2257 = vmatprep.mubr.msk.bf16.mxu1 %vm1365_vm2, %v1217_v22 }
 0x14e   : > { %v856_v28 = vadd.f32 %v855_v27, %v2816_v61  ;;  %v857_v29 = vpop.f32.mrb[43].mxu0  ;;  %1567 = vmatmul.mubr.bf16.gmra.mrb[36].mxu1 %v1216_v21  ;;  %v1110_v31 = vmax.f32 %v852_v24, 0.0 }
 0x14f   : > { %v858_v30 = vadd.f32 %v857_v29, %v2818_v62  ;;  %v1111_v33 = vmax.f32 %v854_v26, 0.0 }
 0x150   : > { %v1112_v32 = vmax.f32 %v856_v28, 0.0 }
 0x151   : > { %v1113_v34 = vmax.f32 %v858_v30, 0.0 }
 0x152   : > { %v1218_v35 = vpack.c.bf16 %v1112_v32, %v1110_v31 }
 0x153   : > { %v1219_v36 = vpack.c.bf16 %v1113_v34, %v1111_v33  ;;  %v861_v37 = vpop.f32.mrb[44].mxu0 }
 0x154   : > { %v862_v38 = vadd.f32 %v861_v37, %v2816_v61  ;;  %v863_v39 = vpop.f32.mrb[45].mxu0 }
 0x155   : > { %v864_v40 = vadd.f32 %v863_v39, %v2818_v62  ;;  %v865_v41 = vpop.f32.mrb[46].mxu0  ;;  %2258 = vmatprep.mubr.msk.bf16.mxu1 %vm1365_vm2, %v1219_v36 }
 0x156   : > { %v866_v42 = vadd.f32 %v865_v41, %v2816_v61  ;;  %v867_v43 = vpop.f32.mrb[47].mxu0  ;;  %1575 = vmatmul.mubr.bf16.gmra.mrb[40].mxu1 %v1218_v35  ;;  %v1114_v45 = vmax.f32 %v862_v38, 0.0 }
 0x157   : > { %v868_v44 = vadd.f32 %v867_v43, %v2818_v62  ;;  %v1115_v47 = vmax.f32 %v864_v40, 0.0 }
 0x158   : > { %v1116_v46 = vmax.f32 %v866_v42, 0.0 }
 0x159   : > { %v1117_v48 = vmax.f32 %v868_v44, 0.0 }
 0x15a   : > { %v1220_v49 = vpack.c.bf16 %v1116_v46, %v1114_v45 }
 0x15b   : > { %v1221_v50 = vpack.c.bf16 %v1117_v48, %v1115_v47  ;;  %v871_v51 = vpop.f32.mrb[48].mxu0 }
 0x15c   : > { %v872_v52 = vadd.f32 %v871_v51, %v2816_v61  ;;  %v873_v53 = vpop.f32.mrb[49].mxu0 }
 0x15d   : > { %v874_v54 = vadd.f32 %v873_v53, %v2818_v62  ;;  %v875_v55 = vpop.f32.mrb[50].mxu0  ;;  %2259 = vmatprep.mubr.msk.bf16.mxu1 %vm1365_vm2, %v1221_v50 }
 0x15e   : > { %v876_v57 = vadd.f32 %v875_v55, %v2816_v61  ;;  %v877_v58 = vpop.f32.mrb[51].mxu0  ;;  %1583 = vmatmul.mubr.bf16.gmra.mrb[44].mxu1 %v1220_v49  ;;  %v1118_v60 = vmax.f32 %v872_v52, 0.0 }
 0x15f   : > { %v878_v59 = vadd.f32 %v877_v58, %v2818_v62  ;;  %v1119_v0 = vmax.f32 %v874_v54, 0.0 }
 0x160   : > { %v1120_v63 = vmax.f32 %v876_v57, 0.0 }
 0x161   : > { %v1121_v1 = vmax.f32 %v878_v59, 0.0 }
 0x162   : > { %v1222_v3 = vpack.c.bf16 %v1120_v63, %v1118_v60 }
 0x163   : > { %v1223_v4 = vpack.c.bf16 %v1121_v1, %v1119_v0  ;;  %v881_v5 = vpop.f32.mrb[52].mxu0 }
 0x164   : > { %v882_v6 = vadd.f32 %v881_v5, %v2816_v61  ;;  %v883_v7 = vpop.f32.mrb[53].mxu0 }
 0x165   : > { %v884_v8 = vadd.f32 %v883_v7, %v2818_v62  ;;  %v885_v9 = vpop.f32.mrb[54].mxu0  ;;  %2260 = vmatprep.mubr.msk.bf16.mxu1 %vm1365_vm2, %v1223_v4 }
 0x166   : > { %v886_v2 = vadd.f32 %v885_v9, %v2816_v61  ;;  %v887_v10 = vpop.f32.mrb[55].mxu0  ;;  %1591 = vmatmul.mubr.bf16.gmra.mrb[48].mxu1 %v1222_v3  ;;  %v1122_v12 = vmax.f32 %v882_v6, 0.0 }
 0x167   : > { %v888_v11 = vadd.f32 %v887_v10, %v2818_v62  ;;  %v1123_v14 = vmax.f32 %v884_v8, 0.0 }
 0x168   : > { %v1124_v13 = vmax.f32 %v886_v2, 0.0 }
 0x169   : > { %v1125_v15 = vmax.f32 %v888_v11, 0.0 }
 0x16a   : > { %v1224_v16 = vpack.c.bf16 %v1124_v13, %v1122_v12 }
 0x16b   : > { %v1225_v17 = vpack.c.bf16 %v1125_v15, %v1123_v14  ;;  %v891_v18 = vpop.f32.mrb[56].mxu0 }
 0x16c   : > { %v892_v19 = vadd.f32 %v891_v18, %v2816_v61  ;;  %v893_v20 = vpop.f32.mrb[57].mxu0 }
 0x16d   : > { %v894_v21 = vadd.f32 %v893_v20, %v2818_v62  ;;  %v895_v22 = vpop.f32.mrb[58].mxu0  ;;  %2261 = vmatprep.mubr.msk.bf16.mxu1 %vm1365_vm2, %v1225_v17 }
 0x16e   : > { %v896_v23 = vadd.f32 %v895_v22, %v2816_v61  ;;  %v897_v24 = vpop.f32.mrb[59].mxu0  ;;  %1599 = vmatmul.mubr.bf16.gmra.mrb[52].mxu1 %v1224_v16  ;;  %v1126_v26 = vmax.f32 %v892_v19, 0.0 }
 0x16f   : > { %v898_v25 = vadd.f32 %v897_v24, %v2818_v62  ;;  %v1127_v28 = vmax.f32 %v894_v21, 0.0 }
 0x170   : > { %v1128_v27 = vmax.f32 %v896_v23, 0.0 }
 0x171   : > { %v1129_v29 = vmax.f32 %v898_v25, 0.0 }
 0x172   : > { %v1226_v30 = vpack.c.bf16 %v1128_v27, %v1126_v26 }
 0x173   : > { %v1227_v31 = vpack.c.bf16 %v1129_v29, %v1127_v28  ;;  %v901_v32 = vpop.f32.mrb[60].mxu0 }
 0x174   : > { %v902_v33 = vadd.f32 %v901_v32, %v2816_v61  ;;  %v903_v34 = vpop.f32.mrb[61].mxu0 }
 0x175   : > { %v904_v35 = vadd.f32 %v903_v34, %v2818_v62  ;;  %v905_v36 = vpop.f32.mrb[62].mxu0  ;;  %2262 = vmatprep.mubr.msk.bf16.mxu1 %vm1365_vm2, %v1227_v31 }
 0x176   : > { %v906_v37 = vadd.f32 %v905_v36, %v2816_v61  ;;  %v907_v38 = vpop.f32.mrb[63].mxu0  ;;  %1607 = vmatmul.mubr.bf16.gmra.mrb[56].mxu1 %v1226_v30  ;;  %v1130_v40 = vmax.f32 %v902_v33, 0.0 }
 0x177   : > { %v908_v39 = vadd.f32 %v907_v38, %v2818_v62  ;;  %v1131_v42 = vmax.f32 %v904_v35, 0.0 }
 0x178   : > { %v1132_v41 = vmax.f32 %v906_v37, 0.0 }
 0x179   : > { %v1133_v43 = vmax.f32 %v908_v39, 0.0 }
 0x17a   : > { %v1228_v44 = vpack.c.bf16 %v1132_v41, %v1130_v40 }
 0x17b   : > { %v1229_v45 = vpack.c.bf16 %v1133_v43, %v1131_v42  ;;  %v911_v46 = vpop.f32.mrb[64].mxu0 }
 0x17c   : > { %v912_v47 = vadd.f32 %v911_v46, %v2816_v61  ;;  %v913_v48 = vpop.f32.mrb[65].mxu0 }
 0x17d   : > { %v914_v49 = vadd.f32 %v913_v48, %v2818_v62  ;;  %v915_v50 = vpop.f32.mrb[66].mxu0  ;;  %2263 = vmatprep.mubr.msk.bf16.mxu1 %vm1365_vm2, %v1229_v45 }
 0x17e   : > { %v916_v51 = vadd.f32 %v915_v50, %v2816_v61  ;;  %v917_v52 = vpop.f32.mrb[67].mxu0  ;;  %1615 = vmatmul.mubr.bf16.gmra.mrb[60].mxu1 %v1228_v44  ;;  %v1134_v54 = vmax.f32 %v912_v47, 0.0 }
 0x17f   : > { %v918_v53 = vadd.f32 %v917_v52, %v2818_v62  ;;  %v1135_v57 = vmax.f32 %v914_v49, 0.0 }
 0x180   : > { %v1136_v55 = vmax.f32 %v916_v51, 0.0 }
 0x181   : > { %v1137_v58 = vmax.f32 %v918_v53, 0.0 }
 0x182   : > { %v1230_v59 = vpack.c.bf16 %v1136_v55, %v1134_v54 }
 0x183   : > { %v1231_v60 = vpack.c.bf16 %v1137_v58, %v1135_v57  ;;  %v921_v63 = vpop.f32.mrb[68].mxu0 }
 0x184   : > { %v922_v0 = vadd.f32 %v921_v63, %v2816_v61  ;;  %v923_v1 = vpop.f32.mrb[69].mxu0 }
 0x185   : > { %v924_v3 = vadd.f32 %v923_v1, %v2818_v62  ;;  %v925_v4 = vpop.f32.mrb[70].mxu0  ;;  %2264 = vmatprep.mubr.msk.bf16.mxu1 %vm1365_vm2, %v1231_v60 }
 0x186   : > { %v926_v5 = vadd.f32 %v925_v4, %v2816_v61  ;;  %v927_v6 = vpop.f32.mrb[71].mxu0  ;;  %1623 = vmatmul.mubr.bf16.gmra.mrb[64].mxu1 %v1230_v59  ;;  %v1138_v8 = vmax.f32 %v922_v0, 0.0 }
 0x187   : > { %v928_v7 = vadd.f32 %v927_v6, %v2818_v62  ;;  %v1139_v2 = vmax.f32 %v924_v3, 0.0 }
 0x188   : > { %v1140_v9 = vmax.f32 %v926_v5, 0.0 }
 0x189   : > { %v1141_v10 = vmax.f32 %v928_v7, 0.0 }
 0x18a   : > { %v1232_v11 = vpack.c.bf16 %v1140_v9, %v1138_v8 }
 0x18b   : > { %v1233_v12 = vpack.c.bf16 %v1141_v10, %v1139_v2  ;;  %v931_v13 = vpop.f32.mrb[72].mxu0 }
 0x18c   : > { %v932_v14 = vadd.f32 %v931_v13, %v2816_v61  ;;  %v933_v15 = vpop.f32.mrb[73].mxu0 }
 0x18d   : > { %v934_v16 = vadd.f32 %v933_v15, %v2818_v62  ;;  %v935_v17 = vpop.f32.mrb[74].mxu0  ;;  %2265 = vmatprep.mubr.msk.bf16.mxu1 %vm1365_vm2, %v1233_v12 }
 0x18e   : > { %v936_v18 = vadd.f32 %v935_v17, %v2816_v61  ;;  %v937_v19 = vpop.f32.mrb[75].mxu0  ;;  %1631 = vmatmul.mubr.bf16.gmra.mrb[68].mxu1 %v1232_v11  ;;  %v1142_v21 = vmax.f32 %v932_v14, 0.0 }
 0x18f   : > { %v938_v20 = vadd.f32 %v937_v19, %v2818_v62  ;;  %v1143_v23 = vmax.f32 %v934_v16, 0.0 }
 0x190   : > { %v1144_v22 = vmax.f32 %v936_v18, 0.0 }
 0x191   : > { %v1145_v24 = vmax.f32 %v938_v20, 0.0 }
 0x192   : > { %v1234_v25 = vpack.c.bf16 %v1144_v22, %v1142_v21 }
 0x193   : > { %v1235_v26 = vpack.c.bf16 %v1145_v24, %v1143_v23  ;;  %v941_v27 = vpop.f32.mrb[76].mxu0 }
 0x194   : > { %v942_v28 = vadd.f32 %v941_v27, %v2816_v61  ;;  %v943_v29 = vpop.f32.mrb[77].mxu0 }
 0x195   : > { %v944_v30 = vadd.f32 %v943_v29, %v2818_v62  ;;  %v945_v31 = vpop.f32.mrb[78].mxu0  ;;  %2266 = vmatprep.mubr.msk.bf16.mxu1 %vm1365_vm2, %v1235_v26 }
 0x196   : > { %v946_v32 = vadd.f32 %v945_v31, %v2816_v61  ;;  %v947_v33 = vpop.f32.mrb[79].mxu0  ;;  %1639 = vmatmul.mubr.bf16.gmra.mrb[72].mxu1 %v1234_v25  ;;  %v1146_v35 = vmax.f32 %v942_v28, 0.0 }
 0x197   : > { %v948_v34 = vadd.f32 %v947_v33, %v2818_v62  ;;  %v1147_v37 = vmax.f32 %v944_v30, 0.0 }
 0x198   : > { %v1148_v36 = vmax.f32 %v946_v32, 0.0 }
 0x199   : > { %v1149_v38 = vmax.f32 %v948_v34, 0.0 }
 0x19a   : > { %v1236_v39 = vpack.c.bf16 %v1148_v36, %v1146_v35 }
 0x19b   : > { %v1237_v40 = vpack.c.bf16 %v1149_v38, %v1147_v37  ;;  %v951_v41 = vpop.f32.mrb[80].mxu0 }
 0x19c   : > { %v952_v42 = vadd.f32 %v951_v41, %v2816_v61  ;;  %v953_v43 = vpop.f32.mrb[81].mxu0 }
 0x19d   : > { %v954_v44 = vadd.f32 %v953_v43, %v2818_v62  ;;  %v955_v45 = vpop.f32.mrb[82].mxu0  ;;  %2267 = vmatprep.mubr.msk.bf16.mxu1 %vm1365_vm2, %v1237_v40 }
 0x19e   : > { %v956_v46 = vadd.f32 %v955_v45, %v2816_v61  ;;  %v957_v47 = vpop.f32.mrb[83].mxu0  ;;  %1647 = vmatmul.mubr.bf16.gmra.mrb[76].mxu1 %v1236_v39  ;;  %v1150_v49 = vmax.f32 %v952_v42, 0.0 }
 0x19f   : > { %v958_v48 = vadd.f32 %v957_v47, %v2818_v62  ;;  %v1151_v51 = vmax.f32 %v954_v44, 0.0 }
 0x1a0   : > { %v1152_v50 = vmax.f32 %v956_v46, 0.0 }
 0x1a1   : > { %v1153_v52 = vmax.f32 %v958_v48, 0.0 }
 0x1a2   : > { %v1238_v53 = vpack.c.bf16 %v1152_v50, %v1150_v49 }
 0x1a3   : > { %v1239_v54 = vpack.c.bf16 %v1153_v52, %v1151_v51  ;;  %v961_v55 = vpop.f32.mrb[84].mxu0 }
 0x1a4   : > { %v962_v57 = vadd.f32 %v961_v55, %v2816_v61  ;;  %v963_v58 = vpop.f32.mrb[85].mxu0 }
 0x1a5   : > { %v964_v59 = vadd.f32 %v963_v58, %v2818_v62  ;;  %v965_v60 = vpop.f32.mrb[86].mxu0  ;;  %2268 = vmatprep.mubr.msk.bf16.mxu1 %vm1365_vm2, %v1239_v54 }
 0x1a6   : > { %v966_v63 = vadd.f32 %v965_v60, %v2816_v61  ;;  %v967_v0 = vpop.f32.mrb[87].mxu0  ;;  %1655 = vmatmul.mubr.bf16.gmra.mrb[80].mxu1 %v1238_v53  ;;  %v1154_v3 = vmax.f32 %v962_v57, 0.0 }
 0x1a7   : > { %v968_v1 = vadd.f32 %v967_v0, %v2818_v62  ;;  %v1155_v5 = vmax.f32 %v964_v59, 0.0 }
 0x1a8   : > { %v1156_v4 = vmax.f32 %v966_v63, 0.0 }
 0x1a9   : > { %v1157_v6 = vmax.f32 %v968_v1, 0.0 }
 0x1aa   : > { %v1240_v7 = vpack.c.bf16 %v1156_v4, %v1154_v3 }
 0x1ab   : > { %v1241_v8 = vpack.c.bf16 %v1157_v6, %v1155_v5  ;;  %v971_v9 = vpop.f32.mrb[88].mxu0 }
 0x1ac   : > { %v972_v2 = vadd.f32 %v971_v9, %v2816_v61  ;;  %v973_v10 = vpop.f32.mrb[89].mxu0 }
 0x1ad   : > { %v974_v11 = vadd.f32 %v973_v10, %v2818_v62  ;;  %v975_v12 = vpop.f32.mrb[90].mxu0  ;;  %2269 = vmatprep.mubr.msk.bf16.mxu1 %vm1365_vm2, %v1241_v8 }
 0x1ae   : > { %v976_v13 = vadd.f32 %v975_v12, %v2816_v61  ;;  %v977_v14 = vpop.f32.mrb[91].mxu0  ;;  %1663 = vmatmul.mubr.bf16.gmra.mrb[84].mxu1 %v1240_v7  ;;  %v1158_v16 = vmax.f32 %v972_v2, 0.0 }
 0x1af   : > { %v978_v15 = vadd.f32 %v977_v14, %v2818_v62  ;;  %v1159_v18 = vmax.f32 %v974_v11, 0.0 }
 0x1b0   : > { %v1160_v17 = vmax.f32 %v976_v13, 0.0 }
 0x1b1   : > { %v1161_v19 = vmax.f32 %v978_v15, 0.0 }
 0x1b2   : > { %v1242_v20 = vpack.c.bf16 %v1160_v17, %v1158_v16 }
 0x1b3   : > { %v1243_v21 = vpack.c.bf16 %v1161_v19, %v1159_v18  ;;  %v981_v22 = vpop.f32.mrb[92].mxu0 }
 0x1b4   : > { %v982_v23 = vadd.f32 %v981_v22, %v2816_v61  ;;  %v983_v24 = vpop.f32.mrb[93].mxu0 }
 0x1b5   : > { %v984_v25 = vadd.f32 %v983_v24, %v2818_v62  ;;  %v985_v26 = vpop.f32.mrb[94].mxu0  ;;  %2270 = vmatprep.mubr.msk.bf16.mxu1 %vm1365_vm2, %v1243_v21 }
 0x1b6   : > { %v986_v27 = vadd.f32 %v985_v26, %v2816_v61  ;;  %v987_v28 = vpop.f32.mrb[95].mxu0  ;;  %1671 = vmatmul.mubr.bf16.gmra.mrb[88].mxu1 %v1242_v20  ;;  %v1162_v30 = vmax.f32 %v982_v23, 0.0 }
 0x1b7   : > { %v988_v29 = vadd.f32 %v987_v28, %v2818_v62  ;;  %v1163_v32 = vmax.f32 %v984_v25, 0.0  ;;  %v2977_v25 = vld [vmem:[%s3217_s4] ss:$0 sm:$0xff] }
 0x1b8   : > { %v1164_v31 = vmax.f32 %v986_v27, 0.0 }
 0x1b9   : > { %v1165_v33 = vmax.f32 %v988_v29, 0.0 }
 0x1ba   : > { %v1244_v34 = vpack.c.bf16 %v1164_v31, %v1162_v30 }
 0x1bb   : > { %v1245_v35 = vpack.c.bf16 %v1165_v33, %v1163_v32  ;;  %v991_v36 = vpop.f32.mrb[96].mxu0 }
 0x1bc   : > { %v992_v37 = vadd.f32 %v991_v36, %v2816_v61  ;;  %v993_v38 = vpop.f32.mrb[97].mxu0 }
 0x1bd   : > { %v994_v39 = vadd.f32 %v993_v38, %v2818_v62  ;;  %v995_v40 = vpop.f32.mrb[98].mxu0  ;;  %2271 = vmatprep.mubr.msk.bf16.mxu1 %vm1365_vm2, %v1245_v35 }
 0x1be   : > { %v996_v41 = vadd.f32 %v995_v40, %v2816_v61  ;;  %v997_v42 = vpop.f32.mrb[99].mxu0  ;;  %1679 = vmatmul.mubr.bf16.gmra.mrb[92].mxu1 %v1244_v34  ;;  %v1166_v44 = vmax.f32 %v992_v37, 0.0 }
 0x1bf   : > { %v998_v43 = vadd.f32 %v997_v42, %v2818_v62  ;;  %v1167_v46 = vmax.f32 %v994_v39, 0.0 }
 0x1c0   : > { %v1168_v45 = vmax.f32 %v996_v41, 0.0 }
 0x1c1   : > { %v1169_v47 = vmax.f32 %v998_v43, 0.0 }
 0x1c2   : > { %v1246_v48 = vpack.c.bf16 %v1168_v45, %v1166_v44 }
 0x1c3   : > { %v1247_v49 = vpack.c.bf16 %v1169_v47, %v1167_v46  ;;  %v1001_v50 = vpop.f32.mrb[100].mxu0 }
 0x1c4   : > { %v1002_v51 = vadd.f32 %v1001_v50, %v2816_v61  ;;  %v1003_v52 = vpop.f32.mrb[101].mxu0 }
 0x1c5   : > { %v1004_v53 = vadd.f32 %v1003_v52, %v2818_v62  ;;  %v1005_v54 = vpop.f32.mrb[102].mxu0  ;;  %2272 = vmatprep.mubr.msk.bf16.mxu1 %vm1365_vm2, %v1247_v49 }
 0x1c6   : > { %v1006_v55 = vadd.f32 %v1005_v54, %v2816_v61  ;;  %v1007_v57 = vpop.f32.mrb[103].mxu0  ;;  %1687 = vmatmul.mubr.bf16.gmra.mrb[96].mxu1 %v1246_v48  ;;  %v1170_v59 = vmax.f32 %v1002_v51, 0.0 }
 0x1c7   : > { %v1008_v58 = vadd.f32 %v1007_v57, %v2818_v62  ;;  %v1171_v63 = vmax.f32 %v1004_v53, 0.0 }
 0x1c8   : > { %v1172_v60 = vmax.f32 %v1006_v55, 0.0 }
 0x1c9   : > { %v1173_v0 = vmax.f32 %v1008_v58, 0.0 }
 0x1ca   : > { %v1248_v1 = vpack.c.bf16 %v1172_v60, %v1170_v59 }
 0x1cb   : > { %v1249_v3 = vpack.c.bf16 %v1173_v0, %v1171_v63  ;;  %v1011_v4 = vpop.f32.mrb[104].mxu0 }
 0x1cc   : > { %v1012_v5 = vadd.f32 %v1011_v4, %v2816_v61  ;;  %v1013_v6 = vpop.f32.mrb[105].mxu0 }
 0x1cd   : > { %v1014_v7 = vadd.f32 %v1013_v6, %v2818_v62  ;;  %v1015_v8 = vpop.f32.mrb[106].mxu0  ;;  %2273 = vmatprep.mubr.msk.bf16.mxu1 %vm1365_vm2, %v1249_v3 }
 0x1ce   : > { %v1016_v9 = vadd.f32 %v1015_v8, %v2816_v61  ;;  %v1017_v2 = vpop.f32.mrb[107].mxu0  ;;  %1695 = vmatmul.mubr.bf16.gmra.mrb[100].mxu1 %v1248_v1  ;;  %v1174_v11 = vmax.f32 %v1012_v5, 0.0 }
 0x1cf   : > { %v1018_v10 = vadd.f32 %v1017_v2, %v2818_v62  ;;  %v1175_v13 = vmax.f32 %v1014_v7, 0.0 }
 0x1d0   : > { %v1176_v12 = vmax.f32 %v1016_v9, 0.0 }
 0x1d1   : > { %v1177_v14 = vmax.f32 %v1018_v10, 0.0 }
 0x1d2   : > { %v1250_v15 = vpack.c.bf16 %v1176_v12, %v1174_v11 }
 0x1d3   : > { %v1251_v16 = vpack.c.bf16 %v1177_v14, %v1175_v13  ;;  %v1021_v17 = vpop.f32.mrb[108].mxu0 }
 0x1d4   : > { %v1022_v18 = vadd.f32 %v1021_v17, %v2816_v61  ;;  %v1023_v19 = vpop.f32.mrb[109].mxu0 }
 0x1d5   : > { %v1024_v20 = vadd.f32 %v1023_v19, %v2818_v62  ;;  %v1025_v21 = vpop.f32.mrb[110].mxu0  ;;  %2274 = vmatprep.mubr.msk.bf16.mxu1 %vm1365_vm2, %v1251_v16 }
 0x1d6   : > { %v1026_v22 = vadd.f32 %v1025_v21, %v2816_v61  ;;  %v1027_v23 = vpop.f32.mrb[111].mxu0  ;;  %1703 = vmatmul.mubr.bf16.gmra.mrb[104].mxu1 %v1250_v15  ;;  %v1178_v26 = vmax.f32 %v1022_v18, 0.0 }
 0x1d7   : > { %v1028_v24 = vadd.f32 %v1027_v23, %v2818_v62  ;;  %v1179_v28 = vmax.f32 %v1024_v20, 0.0 }
 0x1d8   : > { %v1180_v27 = vmax.f32 %v1026_v22, 0.0 }
 0x1d9   : > { %v1181_v29 = vmax.f32 %v1028_v24, 0.0  ;;  %v1496_v30 = vpop.f32.mrb[0].mxu1 }
 0x1da   : > { %v1252_v31 = vpack.c.bf16 %v1180_v27, %v1178_v26  ;;  %v1497_v32 = vadd.f32 %v2977_v25, %v1496_v30  ;;  %v1498_v33 = vpop.f32.mrb[1].mxu1 }
 0x1db   : > { %v1253_v34 = vpack.c.bf16 %v1181_v29, %v1179_v28  ;;  %v1031_v35 = vpop.f32.mrb[112].mxu0  ;;  %v1499_v36 = vpop.f32.mrb[2].mxu1 }
 0x1dc   : > { %v1032_v37 = vadd.f32 %v1031_v35, %v2816_v61  ;;  %v1500_v38 = vadd.f32 %v2977_v25, %v1499_v36  ;;  %v1033_v39 = vpop.f32.mrb[113].mxu0  ;;  %v1501_v40 = vpop.f32.mrb[3].mxu1  ;;  %v1751_v43 = vmax.f32 %v1497_v32, 0.0 }
 0x1dd   : > { %v1034_v41 = vadd.f32 %v1033_v39, %v2818_v62  ;;  %v1035_v42 = vpop.f32.mrb[114].mxu0  ;;  %2275 = vmatprep.mubr.msk.bf16.mxu1 %vm1365_vm2, %v1253_v34 }
 0x1de   : > { %v1752_v44 = vmax.f32 %v1500_v38, 0.0  ;;  %v1036_v45 = vadd.f32 %v1035_v42, %v2816_v61  ;;  %v1037_v46 = vpop.f32.mrb[115].mxu0  ;;  %1711 = vmatmul.mubr.bf16.gmra.mrb[108].mxu1 %v1252_v31  ;;  %v1182_v48 = vmax.f32 %v1032_v37, 0.0 }
 0x1df   : > { %v1038_v47 = vadd.f32 %v1037_v46, %v2818_v62  ;;  %v1183_v51 = vmax.f32 %v1034_v41, 0.0 }
 0x1e0   : > { %v2986_v49 = vpack.c.bf16 %v1752_v44, %v1751_v43  ;;  %v1184_v50 = vmax.f32 %v1036_v45, 0.0 }
 0x1e1   : > { %v1185_v52 = vmax.f32 %v1038_v47, 0.0  ;;  %v1504_v53 = vpop.f32.mrb[4].mxu1 }
 0x1e2   : > { %v1254_v54 = vpack.c.bf16 %v1184_v50, %v1182_v48  ;;  %v1505_v55 = vadd.f32 %v2977_v25, %v1504_v53  ;;  %v1506_v57 = vpop.f32.mrb[5].mxu1 }
 0x1e3   : > { %v1255_v58 = vpack.c.bf16 %v1185_v52, %v1183_v51  ;;  %v1041_v59 = vpop.f32.mrb[116].mxu0  ;;  %v1507_v60 = vpop.f32.mrb[6].mxu1 }
 0x1e4   : > { %v1042_v63 = vadd.f32 %v1041_v59, %v2816_v61  ;;  %v1508_v0 = vadd.f32 %v2977_v25, %v1507_v60  ;;  %v1043_v1 = vpop.f32.mrb[117].mxu0  ;;  %v1509_v3 = vpop.f32.mrb[7].mxu1  ;;  %v1753_v6 = vmax.f32 %v1505_v55, 0.0 }
 0x1e5   : > { %v1044_v4 = vadd.f32 %v1043_v1, %v2818_v62  ;;  %v1045_v5 = vpop.f32.mrb[118].mxu0  ;;  %2276 = vmatprep.mubr.msk.bf16.mxu1 %vm1365_vm2, %v1255_v58 }
 0x1e6   : > { %v1754_v7 = vmax.f32 %v1508_v0, 0.0  ;;  %v1046_v8 = vadd.f32 %v1045_v5, %v2816_v61  ;;  %v1047_v9 = vpop.f32.mrb[119].mxu0  ;;  %1719 = vmatmul.mubr.bf16.gmra.mrb[112].mxu1 %v1254_v54  ;;  %v1186_v10 = vmax.f32 %v1042_v63, 0.0 }
 0x1e7   : > { %v1048_v2 = vadd.f32 %v1047_v9, %v2818_v62  ;;  %v1187_v13 = vmax.f32 %v1044_v4, 0.0 }
 0x1e8   : > { %v2995_v11 = vpack.c.bf16 %v1754_v7, %v1753_v6  ;;  %v1188_v12 = vmax.f32 %v1046_v8, 0.0 }
 0x1e9   : > { %v1189_v14 = vmax.f32 %v1048_v2, 0.0  ;;  %v1512_v15 = vpop.f32.mrb[8].mxu1 }
 0x1ea   : > { %v1256_v16 = vpack.c.bf16 %v1188_v12, %v1186_v10  ;;  %v1513_v17 = vadd.f32 %v2977_v25, %v1512_v15  ;;  %v1514_v18 = vpop.f32.mrb[9].mxu1 }
 0x1eb   : > { %v1257_v19 = vpack.c.bf16 %v1189_v14, %v1187_v13  ;;  %v1051_v20 = vpop.f32.mrb[120].mxu0  ;;  %v1515_v21 = vpop.f32.mrb[10].mxu1 }
 0x1ec   : > { %v1052_v22 = vadd.f32 %v1051_v20, %v2816_v61  ;;  %v1516_v23 = vadd.f32 %v2977_v25, %v1515_v21  ;;  %v1053_v24 = vpop.f32.mrb[121].mxu0  ;;  %v1517_v26 = vpop.f32.mrb[11].mxu1  ;;  %v1755_v29 = vmax.f32 %v1513_v17, 0.0 }
 0x1ed   : > { %v1054_v27 = vadd.f32 %v1053_v24, %v2818_v62  ;;  %v1055_v28 = vpop.f32.mrb[122].mxu0  ;;  %2277 = vmatprep.mubr.msk.bf16.mxu1 %vm1365_vm2, %v1257_v19 }
 0x1ee   : > { %v1756_v30 = vmax.f32 %v1516_v23, 0.0  ;;  %v1056_v31 = vadd.f32 %v1055_v28, %v2816_v61  ;;  %v1057_v32 = vpop.f32.mrb[123].mxu0  ;;  %1727 = vmatmul.mubr.bf16.gmra.mrb[116].mxu1 %v1256_v16  ;;  %v1190_v34 = vmax.f32 %v1052_v22, 0.0 }
 0x1ef   : > { %v1058_v33 = vadd.f32 %v1057_v32, %v2818_v62  ;;  %v1191_v37 = vmax.f32 %v1054_v27, 0.0 }
 0x1f0   : > { %v3004_v35 = vpack.c.bf16 %v1756_v30, %v1755_v29  ;;  %v1192_v36 = vmax.f32 %v1056_v31, 0.0 }
 0x1f1   : > { %v1193_v38 = vmax.f32 %v1058_v33, 0.0  ;;  %v1520_v39 = vpop.f32.mrb[12].mxu1 }
 0x1f2   : > { %v1258_v40 = vpack.c.bf16 %v1192_v36, %v1190_v34  ;;  %v1521_v41 = vadd.f32 %v2977_v25, %v1520_v39  ;;  %v1522_v42 = vpop.f32.mrb[13].mxu1 }
 0x1f3   : > { %v1259_v43 = vpack.c.bf16 %v1193_v38, %v1191_v37  ;;  %v1061_v44 = vpop.f32.mrb[124].mxu0  ;;  %v1523_v45 = vpop.f32.mrb[14].mxu1 }
 0x1f4   : > { %v1062_v46 = vadd.f32 %v1061_v44, %v2816_v61  ;;  %v1524_v47 = vadd.f32 %v2977_v25, %v1523_v45  ;;  %v1063_v48 = vpop.f32.mrb[125].mxu0  ;;  %v1525_v50 = vpop.f32.mrb[15].mxu1  ;;  %v1757_v53 = vmax.f32 %v1521_v41, 0.0 }
 0x1f5   : > { %v1064_v51 = vadd.f32 %v1063_v48, %v2818_v62  ;;  %v1065_v52 = vpop.f32.mrb[126].mxu0  ;;  %2278 = vmatprep.mubr.msk.bf16.mxu1 %vm1365_vm2, %v1259_v43 }
 0x1f6   : > { %v1758_v54 = vmax.f32 %v1524_v47, 0.0  ;;  %v1066_v55 = vadd.f32 %v1065_v52, %v2816_v61  ;;  %v1067_v57 = vpop.f32.mrb[127].mxu0  ;;  %1735 = vmatmul.mubr.bf16.gmra.mrb[120].mxu1 %v1258_v40  ;;  %v1194_v59 = vmax.f32 %v1062_v46, 0.0 }
 0x1f7   : > { %v1068_v58 = vadd.f32 %v1067_v57, %v2818_v62  ;;  %v1195_v0 = vmax.f32 %v1064_v51, 0.0 }
 0x1f8   : > { %v3013_v60 = vpack.c.bf16 %v1758_v54, %v1757_v53  ;;  %v1196_v63 = vmax.f32 %v1066_v55, 0.0  ;;  %v1858_v54 = vsel %vm1365_vm2, %v2986_v49, 0 }
 0x1f9   : > { %v1197_v1 = vmax.f32 %v1068_v58, 0.0  ;;  %v1528_v3 = vpop.f32.mrb[16].mxu1 }
 0x1fa   : > { %v1260_v4 = vpack.c.bf16 %v1196_v63, %v1194_v59  ;;  %v1529_v5 = vadd.f32 %v2977_v25, %v1528_v3  ;;  %v1530_v6 = vpop.f32.mrb[17].mxu1 }
 0x1fb   : > { %v1261_v7 = vpack.c.bf16 %v1197_v1, %v1195_v0  ;;  %v1531_v8 = vpop.f32.mrb[18].mxu1 }
 0x1fc   : > { %v1532_v9 = vadd.f32 %v2977_v25, %v1531_v8  ;;  %v1533_v61 = vpop.f32.mrb[19].mxu1  ;;  %v1759_v2 = vmax.f32 %v1529_v5, 0.0  ;;  %v1861_v5 = vsel %vm1365_vm2, %v2995_v11, 0 }
 0x1fd   : > { %2279 = vmatprep.mubr.msk.bf16.mxu1 %vm1365_vm2, %v1261_v7 }
 0x1fe   : > { %v1760_v62 = vmax.f32 %v1532_v9, 0.0  ;;  %1743 = vmatmul.mubr.bf16.gmra.mrb[124].mxu1 %v1260_v4 }
 0x200   : > { %v3018_v10 = vpack.c.bf16 %v1760_v62, %v1759_v2 }
 0x201   : > { %v1536_v12 = vpop.f32.mrb[20].mxu1 }
 0x202   : > { %v1537_v13 = vadd.f32 %v2977_v25, %v1536_v12  ;;  %v1538_v14 = vpop.f32.mrb[21].mxu1 }
 0x203   : > { %v1539_v15 = vpop.f32.mrb[22].mxu1 }
 0x204   : > { %v1540_v16 = vadd.f32 %v2977_v25, %v1539_v15  ;;  %v1541_v17 = vpop.f32.mrb[23].mxu1  ;;  %v1761_v18 = vmax.f32 %v1537_v13, 0.0  ;;  %v1864_v13 = vsel %vm1365_vm2, %v3004_v35, 0 }
 0x206   : > { %v1762_v19 = vmax.f32 %v1540_v16, 0.0 }
 0x208   : > { %v3022_v20 = vpack.c.bf16 %v1762_v19, %v1761_v18 }
 0x209   : > { %v1544_v21 = vpop.f32.mrb[24].mxu1 }
 0x20a   : > { %v1545_v22 = vadd.f32 %v2977_v25, %v1544_v21  ;;  %v1546_v23 = vpop.f32.mrb[25].mxu1 }
 0x20b   : > { %v1547_v24 = vpop.f32.mrb[26].mxu1  ;;  %v1867_v23 = vsel %vm1365_vm2, %v3013_v60, 0 }
 0x20c   : > { %v1548_v26 = vadd.f32 %v2977_v25, %v1547_v24  ;;  %v1549_v27 = vpop.f32.mrb[27].mxu1  ;;  %v1763_v28 = vmax.f32 %v1545_v22, 0.0 }
 0x20e   : > { %v1764_v29 = vmax.f32 %v1548_v26, 0.0 }
 0x210   : > { %v3026_v30 = vpack.c.bf16 %v1764_v29, %v1763_v28 }
 0x211   : > { %v1552_v31 = vpop.f32.mrb[28].mxu1 }
 0x212   : > { %v1553_v32 = vadd.f32 %v2977_v25, %v1552_v31  ;;  %v1554_v33 = vpop.f32.mrb[29].mxu1 }
 0x213   : > { %v1555_v34 = vpop.f32.mrb[30].mxu1 }
 0x214   : > { %v1556_v36 = vadd.f32 %v2977_v25, %v1555_v34  ;;  %v1557_v37 = vpop.f32.mrb[31].mxu1  ;;  %v1765_v38 = vmax.f32 %v1553_v32, 0.0  ;;  %v1870_v34 = vsel %vm1365_vm2, %v3018_v10, 0 }
 0x216   : > { %v1766_v39 = vmax.f32 %v1556_v36, 0.0 }
 0x218   : > { %v3030_v40 = vpack.c.bf16 %v1766_v39, %v1765_v38 }
 0x219   : > { %v1560_v41 = vpop.f32.mrb[32].mxu1 }
 0x21a   : > { %v1561_v42 = vadd.f32 %v2977_v25, %v1560_v41  ;;  %v1562_v43 = vpop.f32.mrb[33].mxu1 }
 0x21b   : > { %v1563_v44 = vpop.f32.mrb[34].mxu1 }
 0x21c   : > { %v1564_v45 = vadd.f32 %v2977_v25, %v1563_v44  ;;  %v1565_v46 = vpop.f32.mrb[35].mxu1  ;;  %v1767_v47 = vmax.f32 %v1561_v42, 0.0 }
 0x21e   : > { %v1768_v48 = vmax.f32 %v1564_v45, 0.0  ;;  %v1873_v45 = vsel %vm1365_vm2, %v3022_v20, 0 }
 0x220   : > { %v1823_v50 = vpack.c.bf16 %v1768_v48, %v1767_v47 }
 0x221   : > { %v1568_v51 = vpop.f32.mrb[36].mxu1 }
 0x222   : > { %v1569_v52 = vadd.f32 %v2977_v25, %v1568_v51  ;;  %v1570_v53 = vpop.f32.mrb[37].mxu1  ;;  %2325 = vmatprep.subr.msk.bf16.mxu0 %vm1365_vm2, %v1823_v50 }
 0x223   : > { %v1571_v55 = vpop.f32.mrb[38].mxu1  ;;  %2290 = vmatpush3.bf16.xpose.msra.mxu0 %v1858_v54 }
 0x224   : > { %v1572_v57 = vadd.f32 %v2977_v25, %v1571_v55  ;;  %v1573_v58 = vpop.f32.mrb[39].mxu1  ;;  %v1769_v59 = vmax.f32 %v1569_v52, 0.0  ;;  %v1876_v55 = vsel %vm1365_vm2, %v3026_v30, 0  ;;  %v3076_v30 = vld [vmem:[%s3218_s5] sm:$0x1] }
 0x225   : > { %2305 = vmatprep.mubr.msk.bf16.mxu0 %vm1365_vm2, %v3076_v30  ;;  %2323 = vmatprep.mubr.msk.bf16.mxu1 %vm1365_vm2, %v3076_v30 }
 0x226   : > { %v1770_v63 = vmax.f32 %v1572_v57, 0.0 }
 0x228   : > { %v1824_v0 = vpack.c.bf16 %v1770_v63, %v1769_v59 }
 0x229   : > { %v1576_v1 = vpop.f32.mrb[40].mxu1 }
 0x22a   : > { %v1577_v3 = vadd.f32 %v2977_v25, %v1576_v1  ;;  %v1578_v4 = vpop.f32.mrb[41].mxu1  ;;  %2326 = vmatprep.subr.msk.bf16.mxu0 %vm1365_vm2, %v1824_v0 }
 0x22b   : > { %v1579_v6 = vpop.f32.mrb[42].mxu1  ;;  %2292 = vmatpush3.bf16.xpose.msra.mxu0 %v1861_v5  ;;  %v1879_v5 = vsel %vm1365_vm2, %v3030_v40, 0 }
 0x22c   : > { %v1580_v49 = vadd.f32 %v2977_v25, %v1579_v6  ;;  %v1581_v7 = vpop.f32.mrb[43].mxu1  ;;  %v1771_v8 = vmax.f32 %v1577_v3, 0.0 }
 0x22e   : > { %v1772_v9 = vmax.f32 %v1580_v49, 0.0 }
 0x230   : > { %v1825_v61 = vpack.c.bf16 %v1772_v9, %v1771_v8 }
 0x231   : > { %v1584_v2 = vpop.f32.mrb[44].mxu1 }
 0x232   : > { %v1585_v62 = vadd.f32 %v2977_v25, %v1584_v2  ;;  %v1586_v12 = vpop.f32.mrb[45].mxu1  ;;  %2327 = vmatprep.subr.msk.bf16.mxu0 %vm1365_vm2, %v1825_v61 }
 0x233   : > { %v1587_v14 = vpop.f32.mrb[46].mxu1  ;;  %2294 = vmatpush3.bf16.xpose.msra.mxu0 %v1864_v13  ;;  %v1848_v12 = vld [vmem:[%s3219_s6] sm:$0x3] }
 0x234   : > { %v1588_v11 = vadd.f32 %v2977_v25, %v1587_v14  ;;  %v1589_v15 = vpop.f32.mrb[47].mxu1  ;;  %v1773_v16 = vmax.f32 %v1585_v62, 0.0  ;;  %1851 = vperm.xlu0 %2398, %v1848_v12  }
 0x236   : > { %v1774_v17 = vmax.f32 %v1588_v11, 0.0 }
 0x238   : > { %v1826_v18 = vpack.c.bf16 %v1774_v17, %v1773_v16 }
 0x239   : > { %v1592_v19 = vpop.f32.mrb[48].mxu1 }
 0x23a   : > { %v1593_v21 = vadd.f32 %v2977_v25, %v1592_v19  ;;  %v1594_v22 = vpop.f32.mrb[49].mxu1  ;;  %2328 = vmatprep.subr.msk.bf16.mxu0 %vm1365_vm2, %v1826_v18 }
 0x23b   : > { %v1595_v24 = vpop.f32.mrb[50].mxu1  ;;  %2296 = vmatpush3.bf16.xpose.msra.mxu0 %v1867_v23 }
 0x23c   : > { %v1596_v35 = vadd.f32 %v2977_v25, %v1595_v24  ;;  %v1597_v26 = vpop.f32.mrb[51].mxu1  ;;  %v1775_v27 = vmax.f32 %v1593_v21, 0.0 }
 0x23e   : > { %v1776_v28 = vmax.f32 %v1596_v35, 0.0 }
 0x240   : > { %v1827_v29 = vpack.c.bf16 %v1776_v28, %v1775_v27 }
 0x241   : > { %v1600_v31 = vpop.f32.mrb[52].mxu1 }
 0x242   : > { %v1601_v32 = vadd.f32 %v2977_v25, %v1600_v31  ;;  %v1602_v33 = vpop.f32.mrb[53].mxu1  ;;  %2329 = vmatprep.subr.msk.bf16.mxu0 %vm1365_vm2, %v1827_v29 }
 0x243   : > { %v1603_v36 = vpop.f32.mrb[54].mxu1  ;;  %2298 = vmatpush3.bf16.xpose.msra.mxu0 %v1870_v34 }
 0x244   : > { %v1604_v60 = vadd.f32 %v2977_v25, %v1603_v36  ;;  %v1605_v37 = vpop.f32.mrb[55].mxu1  ;;  %v1777_v38 = vmax.f32 %v1601_v32, 0.0 }
 0x246   : > { %v1778_v39 = vmax.f32 %v1604_v60, 0.0 }
 0x248   : > { %v1828_v41 = vpack.c.bf16 %v1778_v39, %v1777_v38 }
 0x249   : > { %v1608_v42 = vpop.f32.mrb[56].mxu1 }
 0x24a   : > { %v1609_v43 = vadd.f32 %v2977_v25, %v1608_v42  ;;  %v1610_v44 = vpop.f32.mrb[57].mxu1  ;;  %2330 = vmatprep.subr.msk.bf16.mxu0 %vm1365_vm2, %v1828_v41 }
 0x24b   : > { %v1611_v46 = vpop.f32.mrb[58].mxu1  ;;  %2300 = vmatpush3.bf16.xpose.msra.mxu0 %v1873_v45 }
 0x24c   : > { %v1612_v10 = vadd.f32 %v2977_v25, %v1611_v46  ;;  %v1613_v47 = vpop.f32.mrb[59].mxu1  ;;  %v1779_v48 = vmax.f32 %v1609_v43, 0.0 }
 0x24e   : > { %v1780_v50 = vmax.f32 %v1612_v10, 0.0 }
 0x250   : > { %v1829_v51 = vpack.c.bf16 %v1780_v50, %v1779_v48 }
 0x251   : > { %v1616_v52 = vpop.f32.mrb[60].mxu1 }
 0x252   : > { %v1617_v53 = vadd.f32 %v2977_v25, %v1616_v52  ;;  %v1618_v54 = vpop.f32.mrb[61].mxu1  ;;  %2331 = vmatprep.subr.msk.bf16.mxu0 %vm1365_vm2, %v1829_v51 }
 0x253   : > { %v1619_v57 = vpop.f32.mrb[62].mxu1  ;;  %2302 = vmatpush3.bf16.xpose.msra.mxu0 %v1876_v55 }
 0x254   : > { %v1620_v20 = vadd.f32 %v2977_v25, %v1619_v57  ;;  %v1621_v58 = vpop.f32.mrb[63].mxu1  ;;  %v1781_v59 = vmax.f32 %v1617_v53, 0.0 }
 0x256   : > { %v1782_v63 = vmax.f32 %v1620_v20, 0.0 }
 0x258   : > { %v1830_v0 = vpack.c.bf16 %v1782_v63, %v1781_v59 }
 0x259   : > { %v1624_v1 = vpop.f32.mrb[64].mxu1 }
 0x25a   : > { %v1625_v3 = vadd.f32 %v2977_v25, %v1624_v1  ;;  %v1626_v4 = vpop.f32.mrb[65].mxu1  ;;  %2332 = vmatprep.subr.msk.bf16.mxu0 %vm1365_vm2, %v1830_v0 }
 0x25b   : > { %v1627_v6 = vpop.f32.mrb[66].mxu1  ;;  %2304 = vmatpush3.bf16.xpose.msra.mxu0 %v1879_v5 }
 0x25c   : > { %v1628_v49 = vadd.f32 %v2977_v25, %v1627_v6  ;;  %v1629_v7 = vpop.f32.mrb[67].mxu1  ;;  %v1783_v8 = vmax.f32 %v1625_v3, 0.0 }
 0x25e   : > { %v1784_v9 = vmax.f32 %v1628_v49, 0.0 }
 0x260   : > { %v3083_v61 = vpack.c.bf16 %v1784_v9, %v1783_v8 }
 0x261   : > { %v1632_v40 = vpop.f32.mrb[68].mxu1 }
 0x262   : > { %v1633_v2 = vadd.f32 %v2977_v25, %v1632_v40  ;;  %v1634_v62 = vpop.f32.mrb[69].mxu1  ;;  %2306 = vmatmul.mubr.msk.bf16.vlgmr.msra.gmra.mrb[128].mxu0 %vm1365_vm2, %v3076_v30 }
 0x263   : > { %v1635_v13 = vpop.f32.mrb[70].mxu1 }
 0x264   : > { %v1636_v14 = vadd.f32 %v2977_v25, %v1635_v13  ;;  %v1637_v11 = vpop.f32.mrb[71].mxu1  ;;  %v1785_v15 = vmax.f32 %v1633_v2, 0.0 }
 0x266   : > { %v1786_v16 = vmax.f32 %v1636_v14, 0.0 }
 0x268   : > { %v3092_v17 = vpack.c.bf16 %v1786_v16, %v1785_v15 }
 0x269   : > { %v1640_v18 = vpop.f32.mrb[72].mxu1 }
 0x26a   : > { %v1641_v19 = vadd.f32 %v2977_v25, %v1640_v18  ;;  %v1642_v21 = vpop.f32.mrb[73].mxu1 }
 0x26b   : > { %v1643_v22 = vpop.f32.mrb[74].mxu1 }
 0x26c   : > { %v1644_v23 = vadd.f32 %v2977_v25, %v1643_v22  ;;  %v1645_v24 = vpop.f32.mrb[75].mxu1  ;;  %v1787_v35 = vmax.f32 %v1641_v19, 0.0 }
 0x26e   : > { %v1788_v26 = vmax.f32 %v1644_v23, 0.0 }
 0x270   : > { %v3096_v27 = vpack.c.bf16 %v1788_v26, %v1787_v35  ;;  %v1906_v26 = vsel %vm1365_vm2, %v3083_v61, 0 }
 0x271   : > { %v1648_v28 = vpop.f32.mrb[76].mxu1 }
 0x272   : > { %v1649_v29 = vadd.f32 %v2977_v25, %v1648_v28  ;;  %v1650_v31 = vpop.f32.mrb[77].mxu1 }
 0x273   : > { %v1651_v32 = vpop.f32.mrb[78].mxu1 }
 0x274   : > { %v1652_v33 = vadd.f32 %v2977_v25, %v1651_v32  ;;  %v1653_v34 = vpop.f32.mrb[79].mxu1  ;;  %v1789_v36 = vmax.f32 %v1649_v29, 0.0 }
 0x276   : > { %v1790_v60 = vmax.f32 %v1652_v33, 0.0 }
 0x278   : > { %v3100_v37 = vpack.c.bf16 %v1790_v60, %v1789_v36 }
 0x279   : > { %v1656_v38 = vpop.f32.mrb[80].mxu1 }
 0x27a   : > { %v1657_v39 = vadd.f32 %v2977_v25, %v1656_v38  ;;  %v1658_v41 = vpop.f32.mrb[81].mxu1 }
 0x27b   : > { %v1659_v42 = vpop.f32.mrb[82].mxu1 }
 0x27c   : > { %v1660_v43 = vadd.f32 %v2977_v25, %v1659_v42  ;;  %v1661_v44 = vpop.f32.mrb[83].mxu1  ;;  %v1791_v45 = vmax.f32 %v1657_v39, 0.0  ;;  %v1909_v39 = vsel %vm1365_vm2, %v3092_v17, 0 }
 0x27e   : > { %v1792_v46 = vmax.f32 %v1660_v43, 0.0 }
 0x280   : > { %v3104_v10 = vpack.c.bf16 %v1792_v46, %v1791_v45 }
 0x281   : > { %v1664_v47 = vpop.f32.mrb[84].mxu1 }
 0x282   : > { %v1665_v48 = vadd.f32 %v2977_v25, %v1664_v47  ;;  %v1666_v50 = vpop.f32.mrb[85].mxu1 }
 0x283   : > { %v1667_v51 = vpop.f32.mrb[86].mxu1  ;;  %v1912_v50 = vsel %vm1365_vm2, %v3096_v27, 0 }
 0x284   : > { %v1668_v52 = vadd.f32 %v2977_v25, %v1667_v51  ;;  %v1669_v53 = vpop.f32.mrb[87].mxu1  ;;  %v1793_v54 = vmax.f32 %v1665_v48, 0.0 }
 0x286   : > { %v1794_v55 = vmax.f32 %v1668_v52, 0.0 }
 0x288   : > { %v3108_v57 = vpack.c.bf16 %v1794_v55, %v1793_v54 }
 0x289   : > { %v1672_v20 = vpop.f32.mrb[88].mxu1 }
 0x28a   : > { %v1673_v58 = vadd.f32 %v2977_v25, %v1672_v20  ;;  %v1674_v59 = vpop.f32.mrb[89].mxu1 }
 0x28b   : > { %v1675_v63 = vpop.f32.mrb[90].mxu1 }
 0x28c   : > { %v1676_v0 = vadd.f32 %v2977_v25, %v1675_v63  ;;  %v1677_v1 = vpop.f32.mrb[91].mxu1  ;;  %v1795_v3 = vmax.f32 %v1673_v58, 0.0  ;;  %v1915_v63 = vsel %vm1365_vm2, %v3100_v37, 0 }
 0x28e   : > { %v1796_v4 = vmax.f32 %v1676_v0, 0.0 }
 0x290   : > { %v3112_v5 = vpack.c.bf16 %v1796_v4, %v1795_v3 }
 0x291   : > { %v1680_v6 = vpop.f32.mrb[92].mxu1 }
 0x292   : > { %v1681_v49 = vadd.f32 %v2977_v25, %v1680_v6  ;;  %v1682_v7 = vpop.f32.mrb[93].mxu1 }
 0x293   : > { %v1683_v8 = vpop.f32.mrb[94].mxu1 }
 0x294   : > { %v1684_v9 = vadd.f32 %v2977_v25, %v1683_v8  ;;  %v1685_v40 = vpop.f32.mrb[95].mxu1  ;;  %v1797_v2 = vmax.f32 %v1681_v49, 0.0 }
 0x296   : > { %v1798_v62 = vmax.f32 %v1684_v9, 0.0  ;;  %v1918_v9 = vsel %vm1365_vm2, %v3104_v10, 0 }
 0x298   : > { %v3116_v12 = vpack.c.bf16 %v1798_v62, %v1797_v2 }
 0x299   : > { %v1688_v13 = vpop.f32.mrb[96].mxu1 }
 0x29a   : > { %v1689_v14 = vadd.f32 %v2977_v25, %v1688_v13  ;;  %v1690_v11 = vpop.f32.mrb[97].mxu1 }
 0x29b   : > { %v1691_v15 = vpop.f32.mrb[98].mxu1 }
 0x29c   : > { %v1692_v16 = vadd.f32 %v2977_v25, %v1691_v15  ;;  %v1693_v18 = vpop.f32.mrb[99].mxu1  ;;  %v1799_v19 = vmax.f32 %v1689_v14, 0.0 }
 0x29d   : > { %v1921_v18 = vsel %vm1365_vm2, %v3108_v57, 0 }
 0x29e   : > { %v1800_v21 = vmax.f32 %v1692_v16, 0.0 }
 0x2a0   : > { %v1839_v22 = vpack.c.bf16 %v1800_v21, %v1799_v19 }
 0x2a1   : > { %v1696_v23 = vpop.f32.mrb[100].mxu1 }
 0x2a2   : > { %v1697_v24 = vadd.f32 %v2977_v25, %v1696_v23  ;;  %v1698_v35 = vpop.f32.mrb[101].mxu1  ;;  %2333 = vmatprep.subr.msk.bf16.mxu1 %vm1365_vm2, %v1839_v22 }
 0x2a3   : > { %v1699_v28 = vpop.f32.mrb[102].mxu1  ;;  %2308 = vmatpush3.bf16.xpose.msra.mxu1 %v1906_v26 }
 0x2a4   : > { %v1700_v29 = vadd.f32 %v2977_v25, %v1699_v28  ;;  %v1701_v31 = vpop.f32.mrb[103].mxu1  ;;  %v1801_v32 = vmax.f32 %v1697_v24, 0.0 }
 0x2a6   : > { %v1802_v33 = vmax.f32 %v1700_v29, 0.0  ;;  %v1924_v29 = vsel %vm1365_vm2, %v3112_v5, 0 }
 0x2a8   : > { %v1840_v34 = vpack.c.bf16 %v1802_v33, %v1801_v32 }
 0x2a9   : > { %v1704_v36 = vpop.f32.mrb[104].mxu1 }
 0x2aa   : > { %v1705_v60 = vadd.f32 %v2977_v25, %v1704_v36  ;;  %v1706_v38 = vpop.f32.mrb[105].mxu1  ;;  %2334 = vmatprep.subr.msk.bf16.mxu1 %vm1365_vm2, %v1840_v34 }
 0x2ab   : > { %v1707_v41 = vpop.f32.mrb[106].mxu1  ;;  %2310 = vmatpush3.bf16.xpose.msra.mxu1 %v1909_v39 }
 0x2ac   : > { %v1708_v61 = vadd.f32 %v2977_v25, %v1707_v41  ;;  %v1709_v42 = vpop.f32.mrb[107].mxu1  ;;  %v1803_v43 = vmax.f32 %v1705_v60, 0.0  ;;  %v1927_v60 = vsel %vm1365_vm2, %v3116_v12, 0 }
 0x2ae   : > { %v1804_v44 = vmax.f32 %v1708_v61, 0.0 }
 0x2b0   : > { %v1841_v45 = vpack.c.bf16 %v1804_v44, %v1803_v43  ;;  %v2541_v44 = vmov 1983009808  }
 0x2b1   : > { %v1712_v46 = vpop.f32.mrb[108].mxu1 }
 0x2b2   : > { %v1713_v47 = vadd.f32 %v2977_v25, %v1712_v46  ;;  %v1714_v48 = vpop.f32.mrb[109].mxu1  ;;  %2335 = vmatprep.subr.msk.bf16.mxu1 %vm1365_vm2, %v1841_v45  ;;  %v2042_v45 = vunpack.c.l.s4 %v2541_v44 }
 0x2b3   : > { %v1715_v51 = vpop.f32.mrb[110].mxu1  ;;  %2312 = vmatpush3.bf16.xpose.msra.mxu1 %v1912_v50  ;;  %v1852_v5 = vpop.permute.xlu0 %1851 }
 0x2b4   : > { %v1716_v17 = vadd.f32 %v2977_v25, %v1715_v51  ;;  %v1717_v52 = vpop.f32.mrb[111].mxu1  ;;  %v1805_v53 = vmax.f32 %v1713_v47, 0.0  ;;  %v2043_v46 = vunpack.c.0.s8 %v2042_v45 }
 0x2b6   : > { %v1806_v54 = vmax.f32 %v1716_v17, 0.0  ;;  %v2046_v12 = vsub.s32 %v2043_v46, %v2806_v56 }
 0x2b8   : > { %v1842_v55 = vpack.c.bf16 %v1806_v54, %v1805_v53 }
 0x2b9   : > { %v1720_v20 = vpop.f32.mrb[112].mxu1 }
 0x2ba   : > { %v1721_v58 = vadd.f32 %v2977_v25, %v1720_v20  ;;  %v1722_v59 = vpop.f32.mrb[113].mxu1  ;;  %2336 = vmatprep.subr.msk.bf16.mxu1 %vm1365_vm2, %v1842_v55 }
 0x2bb   : > { %v1723_v0 = vpop.f32.mrb[114].mxu1  ;;  %2314 = vmatpush3.bf16.xpose.msra.mxu1 %v1915_v63 }
 0x2bc   : > { %v1724_v27 = vadd.f32 %v2977_v25, %v1723_v0  ;;  %v1725_v1 = vpop.f32.mrb[115].mxu1  ;;  %v1807_v3 = vmax.f32 %v1721_v58, 0.0 }
 0x2be   : > { %v1808_v4 = vmax.f32 %v1724_v27, 0.0 }
 0x2c0   : > { %v1843_v6 = vpack.c.bf16 %v1808_v4, %v1807_v3 }
 0x2c1   : > { %v1728_v49 = vpop.f32.mrb[116].mxu1 }
 0x2c2   : > { %v1729_v7 = vadd.f32 %v2977_v25, %v1728_v49  ;;  %v1730_v8 = vpop.f32.mrb[117].mxu1  ;;  %2337 = vmatprep.subr.msk.bf16.mxu1 %vm1365_vm2, %v1843_v6 }
 0x2c3   : > { %v1731_v40 = vpop.f32.mrb[118].mxu1  ;;  %2316 = vmatpush3.bf16.xpose.msra.mxu1 %v1918_v9 }
 0x2c4   : > { %v1732_v37 = vadd.f32 %v2977_v25, %v1731_v40  ;;  %v1733_v2 = vpop.f32.mrb[119].mxu1  ;;  %v1809_v62 = vmax.f32 %v1729_v7, 0.0 }
 0x2c6   : > { %v1810_v13 = vmax.f32 %v1732_v37, 0.0 }
 0x2c8   : > { %v1844_v14 = vpack.c.bf16 %v1810_v13, %v1809_v62 }
 0x2c9   : > { %v1736_v11 = vpop.f32.mrb[120].mxu1 }
 0x2ca   : > { %v1737_v15 = vadd.f32 %v2977_v25, %v1736_v11  ;;  %v1738_v16 = vpop.f32.mrb[121].mxu1  ;;  %2338 = vmatprep.subr.msk.bf16.mxu1 %vm1365_vm2, %v1844_v14 }
 0x2cb   : > { %v1739_v19 = vpop.f32.mrb[122].mxu1  ;;  %2318 = vmatpush3.bf16.xpose.msra.mxu1 %v1921_v18 }
 0x2cc   : > { %v1740_v10 = vadd.f32 %v2977_v25, %v1739_v19  ;;  %v1741_v21 = vpop.f32.mrb[123].mxu1  ;;  %v1811_v22 = vmax.f32 %v1737_v15, 0.0 }
 0x2ce   : > { %v1812_v23 = vmax.f32 %v1740_v10, 0.0 }
 0x2d0   : > { %v1845_v24 = vpack.c.bf16 %v1812_v23, %v1811_v22 }
 0x2d1   : > { %v1744_v35 = vpop.f32.mrb[124].mxu1 }
 0x2d2   : > { %v1745_v26 = vadd.f32 %v2977_v25, %v1744_v35  ;;  %v1746_v28 = vpop.f32.mrb[125].mxu1  ;;  %2339 = vmatprep.subr.msk.bf16.mxu1 %vm1365_vm2, %v1845_v24 }
 0x2d3   : > { %v1747_v31 = vpop.f32.mrb[126].mxu1  ;;  %2320 = vmatpush3.bf16.xpose.msra.mxu1 %v1924_v29 }
 0x2d4   : > { %v1748_v57 = vadd.f32 %v2977_v25, %v1747_v31  ;;  %v1749_v32 = vpop.f32.mrb[127].mxu1  ;;  %v1813_v33 = vmax.f32 %v1745_v26, 0.0 }
 0x2d6   : > { %v1814_v34 = vmax.f32 %v1748_v57, 0.0 }
 0x2d8   : > { %v1846_v36 = vpack.c.bf16 %v1814_v34, %v1813_v33 }
 0x2da   : > { %2340 = vmatprep.subr.msk.bf16.mxu1 %vm1365_vm2, %v1846_v36 }
 0x2db   : > { %2322 = vmatpush3.bf16.xpose.msra.mxu1 %v1927_v60 }
 0x2e2   : > { %2324 = vmatmul.mubr.msk.bf16.vlgmr.msra.gmra.mrb[128].mxu1 %vm1365_vm2, %v3076_v30 }
 0x335   : > { %v1987_v38 = vpop.f32.mrb[128].mxu0 }
 0x336   : > { %v1989_v39 = vpop.f32.mrb[129].mxu0  ;;  %v1988_v41 = vadd.f32 %v1987_v38, %v1852_v5 }
 0x337   : > { %v1991_v61 = vpop.f32.mrb[130].mxu0  ;;  %v1990_v25 = vadd.f32 %v1989_v39, %v1852_v5 }
 0x338   : > { %v1992_v42 = vpop.f32.mrb[131].mxu0 }
 0x339   : > { %v2039_v43 = vcombine.low %v1988_v41, %v1990_v25 }
 0x33b   : > { %v2047_v53 = vrot.slane %v2039_v43, %v2046_v12 }
 0x3b5   : > { %v2028_v47 = vpop.f32.mrb[128].mxu1 }
 0x3b6   : > { %v2030_v48 = vpop.f32.mrb[129].mxu1  ;;  %v2029_v50 = vadd.f32 %v2028_v47, %v1852_v5 }
 0x3b7   : > { %v2032_v30 = vpop.f32.mrb[130].mxu1  ;;  %v2031_v51 = vadd.f32 %v2030_v48, %v1852_v5 }
 0x3b8   : > { %v2033_v17 = vpop.f32.mrb[131].mxu1 }
 0x3b9   : > { %v2040_v52 = vcombine.low %v2029_v50, %v2031_v51 }
 0x3bb   : > { %v2054_v54 = vrot.slane %v2040_v52, %v2046_v12 }
 0x3bd   : > { %v2055_v55 = vcombine.low %v2047_v53, %v2054_v54 }
 0x3bf   : > { %2057 = vst [vmem:[%s296_s12] sm:$0xff] %v2055_v55 }
 0x3c0   : > { %2473 = shalt.err (!%p2470_p5)
}
 0x3c1   : > { %s2474_s23 = scalar_lea.hbm %s3166_s16, 128  ;;  %s2478_s10 = scalar_lea.hbm %s3220_s7, 256 }
 0x3c2   : > { %p2475_p6 = scmp.ne.s32.totalorder %s3166_s16, %s2474_s23  ;;  %p2479_p10 = scmp.lt.u32.totalorder %s3166_s16, %s3220_s7 }
 0x3c3   : > { %p2480_p11 = scmp.lt.u32.totalorder %s2478_s10, %s2474_s23  ;;  %p2482_p13 = scmp.lt.u32.totalorder %s2474_s23, %s3166_s16 }
 0x3c4   : > { %p2476_p7 = pnand %p2475_p6, %p2623_p4 }
 0x3c5   : > { %p2481_p12 = por %p2480_p11, %p2479_p10 }
 0x3c6   : > { %p2477_p9 = pneg %p2476_p7 }
 0x3c7   : > { %p2483_p0 = por %p2482_p13, %p2481_p12 }
 0x3c9   : > { %p2484_p1 = pnand %p2483_p0, %p2477_p9 }
 0x3cb   : > { %2487 = shalt.err (!%p2484_p1)
}
 0x3cc   : > { %2341 = dma.vmem_to_hbm [thread:$0]  (%p2623_p4), %s3168_s15, 128, %s3166_s16, %s2059_s19  }
 0x3cd PF: > { %p2347_p2 = scmp.ge.s32.totalorder %s2538_s29, 2  ;;  %s2087_s18 = sand.u32 1, %s2518_s24  }
 0x3ce   : > { %s2088_s20 = scalar_lea.sflag [#allocation3], %s2087_s18 }
 0x3cf   : > { %p2344_p3 = pnand %p2347_p2, %p2630_p8 }
 0x3d1   : > { %2513 = dma.done.wait (!%p2344_p3), %s2088_s20, 128  }
 0x3d2   : > { %2515 = vsyncadd (!%p2344_p3), %s2088_s20, 4294967168  ;;  %s20_s29 = sadd.s32 1, %s2538_s29   ;;  %s3223_s24 = smov %s2522_s25 }
 0x3d3   : > { %p17_p5 = scmp.ge.s32.totalorder %s20_s29, 4   ;;  %s3224_s25 = smov %s2526_s26 }
 0x3d4   : > { %s3225_s26 = smov %s2636_s14  ;;  %s3226_s27 = smov %s2534_s28 }
 0x3d5   : > { %s3227_s28 = smov %s3229_s9  ;;  %19 = sbr.rel (!%p17_p5) target bundleno = 4 (0x4), region = 83 }
 0x3dc   :  { %2093 = vsyncpa [#allocation3], 1 }
 0x3dd   :  { %2095 = vsyncpa [#allocation3 + $0x1], 1 }

</bundles_post_ra>
